<compile_context>
chip_gen: v5e
topology: v5e:2x2
jax: 0.10.0
libtpu: 0.0.40
codegen_flags: <defaults>
</compile_context>

<pallas_src>
import functools

import jax
import jax.numpy as jnp
from jax import lax
from jax.experimental import pallas as pl
from jax.experimental.pallas import tpu as pltpu


LANE = 128
TILE_N = 128                    # node tile; 256 on v6e (matches 2x256x256 MXU)
TILE_K = 128                    # contraction tile; 512+ on v6e once VMEM allows
MATMUL_DTYPE = jnp.float32      # bf16 on v6e/v7x for large graphs (f32 accumulate)
A_DTYPE = jnp.float32           # int8 on v5e/v6e, bf16 / fp8-e4m3 on v7x
NEG_INF = -1e30
VMEM_LIMIT_BYTES = 32 * 1024 * 1024   # safe on every generation at these tiles


def _round_up(n, m):
    return (n + m - 1) // m * m


def _pad2d(a, rows, cols):
    return jnp.pad(a, ((0, rows - a.shape[0]), (0, cols - a.shape[1])))


def sage_conv_kernel(a_ref, xk_ref, xs_ref, deg_ref, ws_ref, wn_ref, b_ref,
                     o_ref, acc_ref, *, valid_cols, final_layer):
    # a_ref  : (TILE_N, TILE_K)  raw adjacency counts for (node-tile i, nbr-tile k)
    # xk_ref : (TILE_K, K_p)     neighbor feature slab for contraction step k
    # xs_ref : (TILE_N, K_p)     self feature slab for node tile i
    # deg_ref: (TILE_N, 1)       clamped row degrees (f32)
    # ws_ref : (K_p, F_p)        root/self weight   (resident)
    # wn_ref : (K_p, F_p)        neighbor weight    (resident)
    # b_ref  : (1, F_p)          bias               (resident)
    # o_ref  : (TILE_N, F_p)     output tile (written at k == last)
    # acc_ref: (TILE_N, K_p)     f32 neighbor-sum accumulator (VMEM scratch)
    k = pl.program_id(1)

    @pl.when(k == 0)
    def _():
        acc_ref[...] = jnp.zeros_like(acc_ref)

    a = a_ref[...]
    if a.dtype != xk_ref.dtype:                # in-kernel upcast when A ships int8/fp8
        a = a.astype(xk_ref.dtype)
    acc_ref[...] += jnp.dot(a, xk_ref[...], preferred_element_type=jnp.float32)

    @pl.when(k == pl.num_programs(1) - 1)
    def _():
        # Degree division done here in f32 (use approx=True at scale: free EUP slot).
        agg = acc_ref[...] * pl.reciprocal(deg_ref[...])
        y = jnp.dot(xs_ref[...], ws_ref[...], preferred_element_type=jnp.float32)
        y = y + jnp.dot(agg.astype(wn_ref.dtype), wn_ref[...],
                        preferred_element_type=jnp.float32)
        y = y + b_ref[...].astype(jnp.float32)

        if final_layer:
            # Mask lane-padding columns, fused numerically-stable log_softmax (dim=1).
            col = lax.broadcasted_iota(jnp.int32, y.shape, 1)
            y = jnp.where(col < valid_cols, y, NEG_INF)
            m = jnp.max(y, axis=1, keepdims=True)
            shifted = y - m
            lse = jnp.log(jnp.sum(jnp.exp(shifted), axis=1, keepdims=True))
            o_ref[...] = (shifted - lse).astype(o_ref.dtype)
        else:
            o_ref[...] = jnp.maximum(y, 0.0).astype(o_ref.dtype)


def sage_conv(a_p, x_p, deg_p, w_self, w_neigh, b, *,
              valid_cols, final_layer, out_dtype):
    n_p, k_p = x_p.shape
    f_p = w_self.shape[1]
    grid = (n_p // TILE_N, n_p // TILE_K)

    kernel = functools.partial(sage_conv_kernel, valid_cols=valid_cols,
                               final_layer=final_layer)

    flops = 2 * n_p * n_p * k_p + 4 * n_p * k_p * f_p
    bytes_accessed = (a_p.nbytes + 2 * x_p.nbytes + deg_p.nbytes
                      + w_self.nbytes + w_neigh.nbytes + b.nbytes
                      + n_p * f_p * jnp.dtype(out_dtype).itemsize)

    return pl.pallas_call(
        kernel,
        out_shape=jax.ShapeDtypeStruct((n_p, f_p), out_dtype),
        grid_spec=pltpu.PrefetchScalarGridSpec(
            num_scalar_prefetch=0,
            grid=grid,
            in_specs=[
                pl.BlockSpec((TILE_N, TILE_K), lambda i, k: (i, k)),  # A tile
                pl.BlockSpec((TILE_K, k_p),    lambda i, k: (k, 0)),  # X (neighbor slab)
                pl.BlockSpec((TILE_N, k_p),    lambda i, k: (i, 0)),  # X (self slab)
                pl.BlockSpec((TILE_N, 1),      lambda i, k: (i, 0)),  # clamped degree
                pl.BlockSpec((k_p, f_p),       lambda i, k: (0, 0)),  # W_self (resident)
                pl.BlockSpec((k_p, f_p),       lambda i, k: (0, 0)),  # W_neigh (resident)
                pl.BlockSpec((1, f_p),         lambda i, k: (0, 0)),  # bias (resident)
            ],
            out_specs=pl.BlockSpec((TILE_N, f_p), lambda i, k: (i, 0)),
            scratch_shapes=[pltpu.VMEM((TILE_N, k_p), jnp.float32)],
        ),
        compiler_params=pltpu.CompilerParams(
            dimension_semantics=("parallel", "arbitrary"),
            vmem_limit_bytes=VMEM_LIMIT_BYTES,
        ),
        cost_estimate=pl.CostEstimate(
            flops=int(flops),
            transcendentals=int(n_p * f_p) if final_layer else 0,
            bytes_accessed=int(bytes_accessed),
        ),
    )(a_p, x_p, x_p, deg_p, w_self, w_neigh, b)


def graphsage_forward(x, edge_index, params):
    ws1, wn1, b1, ws2, wn2, b2 = params
    n, cin = x.shape
    hid = ws1.shape[1]
    cout = ws2.shape[1]

    # Dense adjacency counts (mean aggregator); messages flow src -> dst.
    # NOT pre-normalized: the degree division happens in-kernel in f32.
    src, dst = edge_index[0], edge_index[1]
    adj = jnp.zeros((n, n), jnp.float32).at[dst, src].add(1.0)
    deg = jnp.sum(adj, axis=1, keepdims=True)

    # Pad to lane/MXU-friendly sizes (zeros keep the math exact; padded logit
    # columns are masked in-kernel; padded rows are sliced off below).
    pad_n = max(TILE_N, TILE_K)
    n_p = _round_up(n, pad_n)
    cin_p = _round_up(cin, LANE)
    hid_p = _round_up(hid, LANE)
    cout_p = _round_up(cout, LANE)

    a_p = _pad2d(adj, n_p, n_p).astype(A_DTYPE)
    deg_p = jnp.maximum(_pad2d(deg, n_p, 1), 1.0).astype(jnp.float32)
    x_p = _pad2d(x, n_p, cin_p).astype(MATMUL_DTYPE)
    ws1_p = _pad2d(ws1, cin_p, hid_p).astype(MATMUL_DTYPE)
    wn1_p = _pad2d(wn1, cin_p, hid_p).astype(MATMUL_DTYPE)
    b1_p = _pad2d(b1, 1, hid_p).astype(jnp.float32)
    ws2_p = _pad2d(ws2, hid_p, cout_p).astype(MATMUL_DTYPE)
    wn2_p = _pad2d(wn2, hid_p, cout_p).astype(MATMUL_DTYPE)
    b2_p = _pad2d(b2, 1, cout_p).astype(jnp.float32)

    # Hidden layer emitted directly in MATMUL_DTYPE -> no interlayer cast pass.
    h_p = sage_conv(a_p, x_p, deg_p, ws1_p, wn1_p, b1_p,
                    valid_cols=hid, final_layer=False, out_dtype=MATMUL_DTYPE)
    out_p = sage_conv(a_p, h_p, deg_p, ws2_p, wn2_p, b2_p,
                      valid_cols=cout, final_layer=True, out_dtype=jnp.float32)
    return out_p[:n, :cout]


def reference_forward(x, edge_index, params):
    ws1, wn1, b1, ws2, wn2, b2 = params
    n = x.shape[0]
    src, dst = edge_index[0], edge_index[1]
    adj = jnp.zeros((n, n), jnp.float32).at[dst, src].add(1.0)
    deg = jnp.sum(adj, axis=1, keepdims=True)
    a_norm = adj / jnp.maximum(deg, 1.0)
    h = jnp.maximum(x @ ws1 + (a_norm @ x) @ wn1 + b1, 0.0)
    logits = h @ ws2 + (a_norm @ h) @ wn2 + b2
    return jax.nn.log_softmax(logits, axis=1)


if __name__ == "__main__":
    # Small shapes consistent with GraphSAGE(in=32, hidden=64, out=16).
    num_nodes, num_edges = 200, 800
    in_channels, hidden_channels, out_channels = 32, 64, 16

    key = jax.random.PRNGKey(0)
    kx, ke, k1, k2, k3, k4, k5, k6 = jax.random.split(key, 8)

    x = jax.random.normal(kx, (num_nodes, in_channels), dtype=jnp.float32)
    edge_index = jax.random.randint(ke, (2, num_edges), 0, num_nodes,
                                    dtype=jnp.int32)

    bound1 = 1.0 / (in_channels ** 0.5)
    ws1 = jax.random.uniform(k1, (in_channels, hidden_channels),
                             minval=-bound1, maxval=bound1, dtype=jnp.float32)
    wn1 = jax.random.uniform(k2, (in_channels, hidden_channels),
                             minval=-bound1, maxval=bound1, dtype=jnp.float32)
    b1 = jax.random.uniform(k3, (1, hidden_channels),
                            minval=-bound1, maxval=bound1, dtype=jnp.float32)

    bound2 = 1.0 / (hidden_channels ** 0.5)
    ws2 = jax.random.uniform(k4, (hidden_channels, out_channels),
                             minval=-bound2, maxval=bound2, dtype=jnp.float32)
    wn2 = jax.random.uniform(k5, (hidden_channels, out_channels),
                             minval=-bound2, maxval=bound2, dtype=jnp.float32)
    b2 = jax.random.uniform(k6, (1, out_channels),
                            minval=-bound2, maxval=bound2, dtype=jnp.float32)

    params = (ws1, wn1, b1, ws2, wn2, b2)

    out = graphsage_forward(x, edge_index, params)
    jax.block_until_ready(out)

    ref = reference_forward(x, edge_index, params)
    assert out.shape == (num_nodes, out_channels)
    assert jnp.allclose(out, ref, atol=1e-4, rtol=1e-4), \
        float(jnp.max(jnp.abs(out - ref)))

    print("KERNEL_OK")
</pallas_src>

<mosaic_0001>
module attributes {stable_mosaic.version = 11 : i64} {
  func.func @sage_conv_kernel(%arg0: i32, %arg1: i32, %arg2: memref<128x128xf32, #tpu.memory_space<vmem>>, %arg3: memref<128x128xf32, #tpu.memory_space<vmem>>, %arg4: memref<128x128xf32, #tpu.memory_space<vmem>>, %arg5: memref<128x1xf32, #tpu.memory_space<vmem>>, %arg6: memref<128x128xf32, #tpu.memory_space<vmem>>, %arg7: memref<128x128xf32, #tpu.memory_space<vmem>>, %arg8: memref<1x128xf32, #tpu.memory_space<vmem>>, %arg9: memref<128x128xf32, #tpu.memory_space<vmem>>, %arg10: memref<128x128xf32, #tpu.memory_space<vmem>>) attributes {dimension_semantics = [#tpu.dimension_semantics<parallel>, #tpu.dimension_semantics<arbitrary>], iteration_bounds = array<i64: 2, 2>, scalar_prefetch = 0 : i64, scratch_operands = 1 : i64, tpu.core_type = #tpu.core_type<tc>, window_params = [{transform_indices = @transform_0, window_bounds = array<i64: 128, 128>}, {transform_indices = @transform_1, window_bounds = array<i64: 128, 128>}, {transform_indices = @transform_2, window_bounds = array<i64: 128, 128>}, {transform_indices = @transform_3, window_bounds = array<i64: 128, 1>}, {pipeline_mode = #tpu.pipeline_mode<synchronous>, transform_indices = @transform_4, window_bounds = array<i64: 128, 128>}, {pipeline_mode = #tpu.pipeline_mode<synchronous>, transform_indices = @transform_5, window_bounds = array<i64: 128, 128>}, {pipeline_mode = #tpu.pipeline_mode<synchronous>, transform_indices = @transform_6, window_bounds = array<i64: 1, 128>}, {transform_indices = @transform_7, window_bounds = array<i64: 128, 128>}]} {
    %c0_i32 = arith.constant 0 : i32
    %0 = arith.cmpi eq, %arg1, %c0_i32 : i32
    %1 = arith.extui %0 : i1 to i32
    %c0_i32_0 = arith.constant 0 : i32
    %2 = arith.cmpi ne, %1, %c0_i32_0 : i32
    scf.if %2 {
      %cst_9 = arith.constant 0.000000e+00 : f32
      %12 = vector.broadcast %cst_9 : f32 to vector<128x128xf32>
      %c0_10 = arith.constant 0 : index
      %c0_11 = arith.constant 0 : index
      %13 = vector.load %arg10[%c0_10, %c0_11] : memref<128x128xf32, #tpu.memory_space<vmem>>, vector<128x128xf32>
      tpu.vector_store %arg10[%c0_10, %c0_11], %12 {strides = array<i32>} : memref<128x128xf32, #tpu.memory_space<vmem>>, vector<128x128xf32>,
    } else {
    }
    %c0 = arith.constant 0 : index
    %c0_1 = arith.constant 0 : index
    %3 = vector.load %arg2[%c0, %c0_1] : memref<128x128xf32, #tpu.memory_space<vmem>>, vector<128x128xf32>
    %c0_2 = arith.constant 0 : index
    %c0_3 = arith.constant 0 : index
    %4 = vector.load %arg10[%c0_2, %c0_3] : memref<128x128xf32, #tpu.memory_space<vmem>>, vector<128x128xf32>
    %c0_4 = arith.constant 0 : index
    %c0_5 = arith.constant 0 : index
    %5 = vector.load %arg3[%c0_4, %c0_5] : memref<128x128xf32, #tpu.memory_space<vmem>>, vector<128x128xf32>
    %cst = arith.constant dense<0.000000e+00> : vector<128x128xf32>
    %6 = tpu.matmul %3, %5, %cst {dimension_numbers = #tpu.dot_dimension_numbers<[1], [0], [0], [1], [0, 0, 1, 1], [], []>} : vector<128x128xf32>, vector<128x128xf32>, vector<128x128xf32> -> vector<128x128xf32>
    %7 = arith.addf %4, %6 : vector<128x128xf32>
    %c0_6 = arith.constant 0 : index
    %c0_7 = arith.constant 0 : index
    %8 = vector.load %arg10[%c0_6, %c0_7] : memref<128x128xf32, #tpu.memory_space<vmem>>, vector<128x128xf32>
    tpu.vector_store %arg10[%c0_6, %c0_7], %7 {strides = array<i32>} : memref<128x128xf32, #tpu.memory_space<vmem>>, vector<128x128xf32>,
    %c1_i32 = arith.constant 1 : i32
    %9 = arith.cmpi eq, %arg1, %c1_i32 : i32
    %10 = arith.extui %9 : i1 to i32
    %c0_i32_8 = arith.constant 0 : i32
    %11 = arith.cmpi ne, %10, %c0_i32_8 : i32
    scf.if %11 {
      %c0_9 = arith.constant 0 : index
      %c0_10 = arith.constant 0 : index
      %12 = vector.load %arg10[%c0_9, %c0_10] : memref<128x128xf32, #tpu.memory_space<vmem>>, vector<128x128xf32>
      %c0_11 = arith.constant 0 : index
      %c0_12 = arith.constant 0 : index
      %13 = vector.load %arg5[%c0_11, %c0_12] : memref<128x1xf32, #tpu.memory_space<vmem>>, vector<128x1xf32>
      %14 = tpu.reciprocal %13 : vector<128x1xf32> -> vector<128x1xf32>
      %15 = vector.broadcast %14 : vector<128x1xf32> to vector<128x128xf32>
      %16 = arith.mulf %12, %15 : vector<128x128xf32>
      %c0_13 = arith.constant 0 : index
      %c0_14 = arith.constant 0 : index
      %17 = vector.load %arg4[%c0_13, %c0_14] : memref<128x128xf32, #tpu.memory_space<vmem>>, vector<128x128xf32>
      %c0_15 = arith.constant 0 : index
      %c0_16 = arith.constant 0 : index
      %18 = vector.load %arg6[%c0_15, %c0_16] : memref<128x128xf32, #tpu.memory_space<vmem>>, vector<128x128xf32>
      %cst_17 = arith.constant dense<0.000000e+00> : vector<128x128xf32>
      %19 = tpu.matmul %17, %18, %cst_17 {dimension_numbers = #tpu.dot_dimension_numbers<[1], [0], [0], [1], [0, 0, 1, 1], [], []>} : vector<128x128xf32>, vector<128x128xf32>, vector<128x128xf32> -> vector<128x128xf32>
      %c0_18 = arith.constant 0 : index
      %c0_19 = arith.constant 0 : index
      %20 = vector.load %arg7[%c0_18, %c0_19] : memref<128x128xf32, #tpu.memory_space<vmem>>, vector<128x128xf32>
      %cst_20 = arith.constant dense<0.000000e+00> : vector<128x128xf32>
      %21 = tpu.matmul %16, %20, %cst_20 {dimension_numbers = #tpu.dot_dimension_numbers<[1], [0], [0], [1], [0, 0, 1, 1], [], []>} : vector<128x128xf32>, vector<128x128xf32>, vector<128x128xf32> -> vector<128x128xf32>
      %22 = arith.addf %19, %21 : vector<128x128xf32>
      %c0_21 = arith.constant 0 : index
      %c0_22 = arith.constant 0 : index
      %23 = vector.load %arg8[%c0_21, %c0_22] : memref<1x128xf32, #tpu.memory_space<vmem>>, vector<1x128xf32>
      %24 = vector.broadcast %23 : vector<1x128xf32> to vector<128x128xf32>
      %25 = arith.addf %22, %24 : vector<128x128xf32>
      %cst_23 = arith.constant 0.000000e+00 : f32
      %26 = vector.broadcast %cst_23 : f32 to vector<128x128xf32>
      %27 = arith.maximumf %25, %26 : vector<128x128xf32>
      %c0_24 = arith.constant 0 : index
      %c0_25 = arith.constant 0 : index
      %28 = vector.load %arg9[%c0_24, %c0_25] : memref<128x128xf32, #tpu.memory_space<vmem>>, vector<128x128xf32>
      tpu.vector_store %arg9[%c0_24, %c0_25], %27 {strides = array<i32>} : memref<128x128xf32, #tpu.memory_space<vmem>>, vector<128x128xf32>,
    } else {
    }
    return
  }
  func.func @transform_0(%arg0: i32, %arg1: i32) -> (i32, i32) {
    %c0_i32 = arith.constant 0 : i32
    return %arg0, %arg1 : i32, i32
  }
  func.func @transform_1(%arg0: i32, %arg1: i32) -> (i32, i32) {
    %c0_i32 = arith.constant 0 : i32
    %c0_i32_0 = arith.constant 0 : i32
    return %arg1, %c0_i32 : i32, i32
  }
  func.func @transform_2(%arg0: i32, %arg1: i32) -> (i32, i32) {
    %c0_i32 = arith.constant 0 : i32
    %c0_i32_0 = arith.constant 0 : i32
    return %arg0, %c0_i32 : i32, i32
  }
  func.func @transform_3(%arg0: i32, %arg1: i32) -> (i32, i32) {
    %c0_i32 = arith.constant 0 : i32
    %c0_i32_0 = arith.constant 0 : i32
    return %arg0, %c0_i32 : i32, i32
  }
  func.func @transform_4(%arg0: i32, %arg1: i32) -> (i32, i32) {
    %c0_i32 = arith.constant 0 : i32
    %c0_i32_0 = arith.constant 0 : i32
    %c0_i32_1 = arith.constant 0 : i32
    return %c0_i32, %c0_i32_0 : i32, i32
  }
  func.func @transform_5(%arg0: i32, %arg1: i32) -> (i32, i32) {
    %c0_i32 = arith.constant 0 : i32
    %c0_i32_0 = arith.constant 0 : i32
    %c0_i32_1 = arith.constant 0 : i32
    return %c0_i32, %c0_i32_0 : i32, i32
  }
  func.func @transform_6(%arg0: i32, %arg1: i32) -> (i32, i32) {
    %c0_i32 = arith.constant 0 : i32
    %c0_i32_0 = arith.constant 0 : i32
    %c0_i32_1 = arith.constant 0 : i32
    return %c0_i32, %c0_i32_0 : i32, i32
  }
  func.func @transform_7(%arg0: i32, %arg1: i32) -> (i32, i32) {
    %c0_i32 = arith.constant 0 : i32
    %c0_i32_0 = arith.constant 0 : i32
    return %arg0, %c0_i32 : i32, i32
  }
}

</mosaic_0001>

<bundles_post_ra>
// kernel: tpu_custom_call.1
= control target key start
LH: loop header
LB: loop body
LE: loop exit
PB: predicated region body
PF: predicated region fallthrough
CT: control target
= control target key end

     0   :  { %s2675_s0 = inlined_call_operand.hbm [shape: f32[256,256], index: 0, kind: input, shape index: {}]   ;;  %s2676_s1 = inlined_call_operand.vmem [shape: f32[256,128], index: 1, kind: input, shape index: {}]   ;;  %s2677_s2 = inlined_call_operand.hbm [shape: f32[256,128], index: 2, kind: input, shape index: {}]   ;;  %s2678_s3 = inlined_call_operand.vmem [shape: f32[256,1], index: 3, kind: input, shape index: {}]   ;;  %s2679_s4 = inlined_call_operand.hbm [shape: f32[128,128], index: 4, kind: input, shape index: {}]   ;;  %s2680_s5 = inlined_call_operand.hbm [shape: f32[128,128], index: 5, kind: input, shape index: {}]   ;;  %s2681_s6 = inlined_call_operand.vmem [shape: f32[1,128], index: 6, kind: input, shape index: {}]   ;;  %s2682_s7 = inlined_call_operand.hbm [shape: f32[256,128], index: 7, kind: output, shape index: {}]  }
   0x1   :  { %2692 = sst [smem:[#allocation21_spill]] %s2675_s0 }
   0x2   :  { %2693 = sst [smem:[#allocation22_spill]] %s2676_s1 }
   0x3   :  { %2694 = sst [smem:[#allocation23_spill]] %s2678_s3 }
   0x4   :  { %2695 = sst [smem:[#allocation24_spill]] %s2679_s4 }
   0x5   :  { %2696 = sst [smem:[#allocation25_spill]] %s2680_s5 }
   0x6   :  { %2697 = sst [smem:[#allocation26_spill]] %s2681_s6 }
   0x7   :  { %2698 = sst [smem:[#allocation27_spill]] %s2682_s7 }
   0x8   :  { %12 = vsyncpa [#allocation4], 0 }
   0x9   :  { %14 = vsyncpa [#allocation4 + $0x1], 0 }
   0xa   :  { %15 = vsyncpa [#allocation7], 0 }
   0xb   :  { %17 = vsyncpa [#allocation7 + $0x1], 0 }
   0xc   :  { %18 = vsyncpa [#allocation10], 0 }
   0xd   :  { %19 = vsyncpa [#allocation5], 0 }
   0xe   :  { %21 = vsyncpa [#allocation5 + $0x1], 0  ;;  %s1945_s24 = smov 0   ;;  %s1947_s25 = smov 0  }
   0xf   :  { %s1949_s26 = smov 0   ;;  %s1951_s27 = smov 0  }
  0x10   :  { %s1953_s28 = smov 0   ;;  %s1955_s29 = smov 0  }
  0x11   :  { %s1957_s30 = smov 0   ;;  %s1959_s8 = smov 0  }
  0x12   :  { %s1961_s9 = smov 0   ;;  %s1963_s10 = smov 0  }
  0x13   :  { %s1965_s11 = smov 0  }
  0x14 LB: > { %2699 = sst [smem:[#allocation17_spill]] %s1854_s24  ;;  %s1999_s12 = sadd.s32 4294967295, %s1894_s11   ;;  %s1894_s11 = sphi %s1965_s11, %s27_s11   ;;  %s1890_s10 = sphi %s1963_s10, %s2780_s10   ;;  %s1886_s9 = sphi %s1961_s9, %s2779_s9   ;;  %s1882_s8 = sphi %s1959_s8, %s2778_s8   ;;  %s1878_s30 = sphi %s1957_s30, %s2777_s30   ;;  %s1874_s29 = sphi %s1955_s29, %s2776_s29   ;;  %s1870_s28 = sphi %s1953_s28, %s2775_s28   ;;  %s1866_s27 = sphi %s1951_s27, %s2774_s27   ;;  %s1862_s26 = sphi %s1949_s26, %s2773_s26   ;;  %s1858_s25 = sphi %s1947_s25, %s2772_s25   ;;  %s1854_s24 = sphi %s1945_s24, %s2771_s24  }
  0x15   : > { %s1357_s13 = sadd.s32 4294967294, %s1894_s11   ;;  %p61_p0 = scmp.ne.s32.totalorder %s1870_s28, %s1866_s27 }
  0x16   : > { %p62_p1 = scmp.eq.s32.totalorder %s1999_s12, 0  ;;  %p113_p2 = scmp.ne.s32.totalorder %s1858_s25, %s1854_s24 }
  0x17   : > { %p226_p3 = scmp.eq.s32.totalorder %s1999_s12, 3  ;;  %p232_p5 = scmp.eq.s32.totalorder %s1357_s13, 3 }
  0x18   : > { %p2009_p4 = por %p62_p1, %p61_p0  ;;  %p2015_p6 = por %p113_p2, %p62_p1 }
  0x19   : > { %p1358_p7 = scmp.ge.s32.totalorder %s1894_s11, 1  ;;  %p2020_p8 = por %p232_p5, %p113_p2 }
  0x1a   : > { %p239_p9 = scmp.lt.s32.totalorder %s1894_s11, 5  ;;  %s2704_s4 = sld [smem:[#allocation24_spill]] }
  0x1b   : > { %s2702_s16 = scalar_select %p2020_p8, 1, 0 }
  0x1c   : > { %p2028_p10 = pnand %p1358_p7, %p239_p9  ;;  %s1896_s21 = smov [#allocation8]  }
  0x1d   : > { %2703 = sst [smem:[#allocation18_spill]] %s2702_s16  ;;  %s252_s22 = sshll.u32 %s1896_s21, 4  ;;  %s253_s22 = int_to_ptr.vmem [resolvable:$true] %s252_s22 }
  0x1e   : > { %p1483_p11 = pneg %p2028_p10  ;;  %s2706_s5 = sld [smem:[#allocation25_spill]] }
  0x1f   : > { %s2683_s17 = smov 128   ;;  %s2685_s18 = smov 8  }
  0x20   : > { %s250_s19 = sshll.u32 %s2704_s4, 4  ;;  %p1484_p12 = pnand %p1483_p11, %p62_p1  ;;  %s251_s19 = int_to_ptr.hbm [resolvable:$true] %s250_s19 }
  0x21   : > { %s1899_s21 = smov [#allocation9]   ;;  %s36_s23 = sadd.s32 1, %s1886_s9 }
  0x22   : > { %1486 = dma.hbm_to_vmem [thread:$0]  (!%p1484_p12), %s251_s19, 2048, %s253_s22, [#allocation7], %s2683_s17, %s2683_s17, %s2685_s18  }
  0x23   : > { %s266_s4 = sshll.u32 %s1899_s21, 4  ;;  %s39_s27 = sadd.s32 1, %s1890_s10  ;;  %s267_s4 = int_to_ptr.vmem [resolvable:$true] %s266_s4 }
  0x24   : > { %s264_s13 = sshll.u32 %s2706_s5, 4  ;;  %p37_p13 = scmp.ge.s32.totalorder %s36_s23, 2  ;;  %s265_s13 = int_to_ptr.hbm [resolvable:$true] %s264_s13 }
  0x25   : > { %1489 = dma.hbm_to_vmem [thread:$0]  (!%p1484_p12), %s265_s13, 2048, %s267_s4, [#allocation10], %s2683_s17, %s2683_s17, %s2685_s18  }
  0x26   : > { %s48_s5 = sadd.s32 1, %s1874_s29  ;;  %p55_p0 = scmp.ne.s32.totalorder %s1874_s29, %s1870_s28 }
  0x27   : > { %p56_p2 = scmp.eq.s32.totalorder %s1894_s11, 0  ;;  %s2782_s23 = smov (%p37_p13, %s36_s23), 0 }
  0x28   : > { %2707 = sst [smem:[#allocation19_spill]] %s2782_s23  ;;  %s2784_s27 = smov (!%p37_p13, %s39_s27), %s1890_s10 }
  0x29   : > { %s44_s19 = ssub.s32 %s1886_s9, %s2782_s23  ;;  %p2058_p5 = por %p56_p2, %p55_p0 }
  0x2a   : > { %p41_p7 = scmp.ge.s32.totalorder %s2784_s27, 2  ;;  %p1503_p9 = scmp.lt.s32.totalorder %s1894_s11, 4 }
  0x2b   : > { %s283_s4 = sand.u32 1, %s1874_s29   ;;  %s1386_s13 = sshll.u32 %s1890_s10, 5 }
  0x2c   : > { %s2786_s27 = smov (%p41_p7, %s2784_s27), 0  ;;  %s1362_s21 = sshll.u32 %s283_s4, 7 }
  0x2d   : > { %2709 = sst [smem:[#allocation20_spill]] %s2786_s27  ;;  %s43_s17 = ssub.s32 %s1890_s10, %s2786_s27 }
  0x2e   : > { %s45_s18 = sor.u32 %s44_s19, %s43_s17  ;;  %p98_p11 = scmp.eq.s32.totalorder %s43_s17, 0 }
  0x2f   : > { %p46_p12 = scmp.eq.s32.totalorder %s45_s18, 0  ;;  %s292_s23 = sadd.s32 %s1886_s9, %s1386_s13 }
  0x30   : > { %s1365_s16 = sshll.u32 %s292_s23, 3  ;;  %s287_s24 = scalar_lea.vmem [#allocation3], %s1362_s21 }
  0x31   : > { %s297_s7 = sshll.u32 %s287_s24, 4  ;;  %s2710_s0 = sld [smem:[#allocation21_spill]]  ;;  %s298_s7 = int_to_ptr.vmem [resolvable:$true] %s297_s7 }
  0x32   : > { %s2071_s6 = scalar_select %p46_p12, %s1874_s29, %s48_s5  }
  0x33   : > { %p1491_p13 = pnand %p1503_p9, %p2058_p5  ;;  %s284_s18 = scalar_lea.sflag [#allocation4], %s283_s4 }
  0x34   : > { %s1900_s23 = smov 256   ;;  %s2711_s13 = smov 8  }
  0x35   : > { %s2712_s21 = smov 128   ;;  %s100_s24 = sadd.s32 1, %s1862_s26 }
  0x36   : > { %p107_p0 = scmp.ne.s32.totalorder %s1862_s26, %s1858_s25  ;;  %s316_s3 = sand.u32 1, %s1894_s11  }
  0x37   : > { %s294_s19 = scalar_lea.hbm %s2710_s0, %s1365_s16  ;;  %s318_s16 = sand.u32 1, %s1862_s26  }
  0x38   : > { %s295_s27 = sshll.u32 %s294_s19, 4  ;;  %p2091_p7 = por %p226_p3, %p107_p0  ;;  %s296_s27 = int_to_ptr.hbm [resolvable:$true] %s295_s27 }
  0x39   : > { %1493 = dma.hbm_to_vmem [thread:$0]  (!%p1491_p13), %s296_s27, 2048, %s298_s7, %s284_s18, %s1900_s23, %s2712_s21, %s2711_s13  }
  0x3a   : > { %s2087_s5 = scalar_select %p98_p11, %s1862_s26, %s100_s24  }
  0x3b   : > { %p109_p5 = por %p107_p0, %p56_p2  ;;  %s1366_s22 = sshll.u32 %s318_s16, 7 }
  0x3c   : > { %s1387_s4 = sshll.u32 %s1890_s10, 7  ;;  %s320_s18 = scalar_lea.vmem [#allocation6], %s1366_s22 }
  0x3d   : > { %s325_s7 = scalar_lea.hbm %s2677_s2, %s1387_s4  ;;  %s328_s17 = sshll.u32 %s320_s18, 4  ;;  %s329_s17 = int_to_ptr.vmem [resolvable:$true] %s328_s17 }
  0x3e   : > { %s326_s27 = sshll.u32 %s325_s7, 4  ;;  %p1494_p3 = pnand %p1503_p9, %p109_p5  ;;  %s327_s27 = int_to_ptr.hbm [resolvable:$true] %s326_s27 }
  0x3f   : > { %s317_s23 = scalar_lea.sflag [#allocation7], %s316_s3  ;;  %349 = sbr.rel (%p2028_p10) target bundleno = 652 (0x28c), region = 48 }
  0x40   : > { %1496 = dma.hbm_to_vmem [thread:$0]  (!%p1494_p3), %s327_s27, 2048, %s329_s17, %s317_s23, %s2712_s21, %s2712_s21, %s2711_s13  }
  0x41   : > { %s351_s24 = sand.u32 (!%p2028_p10), 1, %s1870_s28  }
  0x42   : > { %s1370_s0 = sshll.u32 (!%p2028_p10), %s351_s24, 7  ;;  %s352_s16 = scalar_lea.sflag (!%p2028_p10), [#allocation4], %s351_s24 }
  0x43   : > { %s2111_s4 = scalar_lea.vmem (!%p2028_p10), [#allocation3], %s1370_s0 }
  0x44   : > { %1833 = dma.done.wait (%p2009_p4), %s352_s16, 2048  }
  0x45   : > { %1835 = vsyncadd (%p2009_p4), %s352_s16, 4294965248  ;;  %s361_s13 = sand.u32 1, %s1999_s12   ;;  %s363_s21 = sand.u32 1, %s1858_s25  }
  0x46   : > { %s1371_s20 = sshll.u32 %s363_s21, 7  ;;  %s362_s3 = scalar_lea.sflag [#allocation7], %s361_s13 }
  0x47   : > { %s2121_s22 = scalar_lea.vmem [#allocation6], %s1371_s20 }
  0x48   : > { %1837 = dma.done.wait (%p2015_p6), %s362_s3, 2048  }
  0x49   : > { %1839 = vsyncadd (%p2015_p6), %s362_s3, 4294965248 }
  0x4a   : > { %1841 = dma.done.wait (%p62_p1), [#allocation7], 2048  }
  0x4b   : > { %1843 = vsyncadd (%p62_p1), [#allocation7], 4294965248 }
  0x4c   : > { %1845 = dma.done.wait (%p62_p1), [#allocation10], 2048  }
  0x4d   : > { %1847 = vsyncadd (%p62_p1), [#allocation10], 4294965248  ;;  %s1375_s14 = sshll.u32 %s1878_s30, 4  ;;  %s1377_s19 = sshll.u32 %s1882_s8, 4 }
  0x4e   : > { %p424_p4 = scmp.lt.s32.totalorder %s1375_s14, 31  ;;  %p431_p10 = scmp.lt.s32.totalorder %s1377_s19, 31 }
  0x4f   : > { %s2714_s18 = sld [smem:[#allocation22_spill]]  ;;  %s2147_s13 = scalar_lea.vmem [#allocation11], %s1371_s20 }
  0x50   : > { %s2788_s14 = smov (!%p424_p4, %s1375_s14), 31  ;;  %s2790_s19 = smov (!%p431_p10, %s1377_s19), 31 }
  0x51   : > { %s1376_s15 = sshll.u32 %s2788_s14, 3  ;;  %s1378_s23 = sshll.u32 %s2790_s19, 3 }
  0x52   : > { %s2715_s16 = sld [smem:[#allocation23_spill]]  ;;  %p1379_p1 = scmp.ne.s32.totalorder %s1878_s30, 0 }
  0x54   : > { %440 = sbr.rel (%p1379_p1) target bundleno = 106 (0x6a), region = 68 }
  0x55   : > { %s2140_s17 = scalar_lea.vmem %s2714_s18, %s1376_s15 }
  0x58   : > { %s2145_s12 = scalar_lea.vmem %s2715_s16, %s1378_s23 }
  0x59   : > { %v1901_v0 = vmov 0.0  }
  0x5a   : > { %441 = vst [vmem:[#allocation2 + $0x30] sm:$0xff] %v1901_v0 }
  0x5b   : > { %442 = vst [vmem:[#allocation2] sm:$0xff] %v1901_v0 }
  0x5c   : > { %443 = vst [vmem:[#allocation2 + $0x58] sm:$0xff] %v1901_v0 }
  0x5d   : > { %444 = vst [vmem:[#allocation2 + $0x18] sm:$0xff] %v1901_v0 }
  0x5e   : > { %445 = vst [vmem:[#allocation2 + $0x50] sm:$0xff] %v1901_v0 }
  0x5f   : > { %446 = vst [vmem:[#allocation2 + $0x68] sm:$0xff] %v1901_v0 }
  0x60   : > { %447 = vst [vmem:[#allocation2 + $0x8] sm:$0xff] %v1901_v0 }
  0x61   : > { %448 = vst [vmem:[#allocation2 + $0x48] sm:$0xff] %v1901_v0 }
  0x62   : > { %449 = vst [vmem:[#allocation2 + $0x40] sm:$0xff] %v1901_v0 }
  0x63   : > { %450 = vst [vmem:[#allocation2 + $0x20] sm:$0xff] %v1901_v0 }
  0x64   : > { %451 = vst [vmem:[#allocation2 + $0x10] sm:$0xff] %v1901_v0 }
  0x65   : > { %452 = vst [vmem:[#allocation2 + $0x38] sm:$0xff] %v1901_v0 }
  0x66   : > { %453 = vst [vmem:[#allocation2 + $0x60] sm:$0xff] %v1901_v0 }
  0x67   : > { %454 = vst [vmem:[#allocation2 + $0x70] sm:$0xff] %v1901_v0 }
  0x68   : > { %455 = vst [vmem:[#allocation2 + $0x78] sm:$0xff] %v1901_v0 }
  0x69   : > { %456 = vst [vmem:[#allocation2 + $0x28] sm:$0xff] %v1901_v0 }
  0x6a PF: > { %v504_v1 = vld [vmem:[%s2140_s17 + $0x78] sm:$0xff]  ;;  %v503_v2 = vld [vmem:[%s2140_s17 + $0x70] sm:$0xff]  ;;  %v502_v3 = vld [vmem:[%s2140_s17 + $0x68] sm:$0xff]  ;;  %p1380_p6 = scmp.ne.s32.totalorder %s1878_s30, 1 }
  0x6b   : > { %1390 = vmatpush.msra.mxu2 %v504_v1  ;;  %1391 = vmatpush.msra.mxu3 %v504_v1  ;;  %v501_v4 = vld [vmem:[%s2140_s17 + $0x60] sm:$0xff]  ;;  %v500_v5 = vld [vmem:[%s2140_s17 + $0x58] sm:$0xff]  ;;  %v499_v6 = vld [vmem:[%s2140_s17 + $0x50] sm:$0xff]  ;;  %s2765_s20 = sld [smem:[#allocation26_spill]] (!%p1380_p6) }
  0x6c   : > { %505 = vmatpush.msra.mxu0 %v504_v1  ;;  %1389 = vmatpush.msra.mxu1 %v504_v1  ;;  %v498_v7 = vld [vmem:[%s2140_s17 + $0x48] sm:$0xff]  ;;  %v497_v8 = vld [vmem:[%s2140_s17 + $0x40] sm:$0xff]  ;;  %v496_v9 = vld [vmem:[%s2140_s17 + $0x38] sm:$0xff] }
  0x6d   : > { %1393 = vmatpush.msra.mxu2 %v503_v2  ;;  %1394 = vmatpush.msra.mxu3 %v503_v2  ;;  %v495_v10 = vld [vmem:[%s2140_s17 + $0x30] sm:$0xff]  ;;  %v494_v11 = vld [vmem:[%s2140_s17 + $0x28] sm:$0xff]  ;;  %v493_v12 = vld [vmem:[%s2140_s17 + $0x20] sm:$0xff] }
  0x6e   : > { %506 = vmatpush.msra.mxu0 %v503_v2  ;;  %1392 = vmatpush.msra.mxu1 %v503_v2  ;;  %v492_v13 = vld [vmem:[%s2140_s17 + $0x18] sm:$0xff]  ;;  %v491_v14 = vld [vmem:[%s2140_s17 + $0x10] sm:$0xff]  ;;  %v490_v15 = vld [vmem:[%s2140_s17 + $0x8] sm:$0xff] }
  0x6f   : > { %1396 = vmatpush.msra.mxu2 %v502_v3  ;;  %1397 = vmatpush.msra.mxu3 %v502_v3  ;;  %v489_v16 = vld [vmem:[%s2140_s17] sm:$0xff]  ;;  %v466_v21 = vld [vmem:[%s2111_s4 + $0x48] sm:$0xff]  ;;  %v467_v25 = vld [vmem:[%s2111_s4 + $0x50] sm:$0xff] }
  0x70   : > { %507 = vmatpush.msra.mxu0 %v502_v3  ;;  %1395 = vmatpush.msra.mxu1 %v502_v3  ;;  %v465_v17 = vld [vmem:[%s2111_s4 + $0x40] sm:$0xff]  ;;  %v470_v22 = vld [vmem:[%s2111_s4 + $0x68] sm:$0xff]  ;;  %v471_v26 = vld [vmem:[%s2111_s4 + $0x70] sm:$0xff] }
  0x71   : > { %1399 = vmatpush.msra.mxu2 %v501_v4  ;;  %1400 = vmatpush.msra.mxu3 %v501_v4  ;;  %v469_v18 = vld [vmem:[%s2111_s4 + $0x60] sm:$0xff]  ;;  %v458_v23 = vld [vmem:[%s2111_s4 + $0x8] sm:$0xff]  ;;  %v459_v27 = vld [vmem:[%s2111_s4 + $0x10] sm:$0xff] }
  0x72   : > { %508 = vmatpush.msra.mxu0 %v501_v4  ;;  %1398 = vmatpush.msra.mxu1 %v501_v4  ;;  %v457_v19 = vld [vmem:[%s2111_s4] sm:$0xff]  ;;  %v462_v24 = vld [vmem:[%s2111_s4 + $0x28] sm:$0xff]  ;;  %v463_v28 = vld [vmem:[%s2111_s4 + $0x30] sm:$0xff] }
  0x73   : > { %1402 = vmatpush.msra.mxu2 %v500_v5  ;;  %1403 = vmatpush.msra.mxu3 %v500_v5  ;;  %v461_v20 = vld [vmem:[%s2111_s4 + $0x20] sm:$0xff]  ;;  %v468_v29 = vld [vmem:[%s2111_s4 + $0x58] sm:$0xff]  ;;  %v473_v33 = vld [vmem:[#allocation2 + $0x30] sm:$0xff] }
  0x74   : > { %509 = vmatpush.msra.mxu0 %v500_v5  ;;  %1401 = vmatpush.msra.mxu1 %v500_v5  ;;  %v472_v30 = vld [vmem:[%s2111_s4 + $0x78] sm:$0xff]  ;;  %v477_v34 = vld [vmem:[#allocation2 + $0x50] sm:$0xff]  ;;  %v481_v39 = vld [vmem:[#allocation2 + $0x40] sm:$0xff] }
  0x75   : > { %1405 = vmatpush.msra.mxu2 %v499_v6  ;;  %1406 = vmatpush.msra.mxu3 %v499_v6  ;;  %v460_v31 = vld [vmem:[%s2111_s4 + $0x18] sm:$0xff]  ;;  %v485_v40 = vld [vmem:[#allocation2 + $0x60] sm:$0xff]  ;;  %v478_v46 = vld [vmem:[#allocation2 + $0x68] sm:$0xff] }
  0x76   : > { %510 = vmatpush.msra.mxu0 %v499_v6  ;;  %1404 = vmatpush.msra.mxu1 %v499_v6  ;;  %v464_v32 = vld [vmem:[%s2111_s4 + $0x38] sm:$0xff]  ;;  %v474_v45 = vld [vmem:[#allocation2] sm:$0xff]  ;;  %v486_v52 = vld [vmem:[#allocation2 + $0x70] sm:$0xff] }
  0x77   : > { %1408 = vmatpush.msra.mxu2 %v498_v7  ;;  %1409 = vmatpush.msra.mxu3 %v498_v7  ;;  %v482_v51 = vld [vmem:[#allocation2 + $0x20] sm:$0xff]  ;;  %v475_v57 = vld [vmem:[#allocation2 + $0x58] sm:$0xff]  ;;  %v479_v58 = vld [vmem:[#allocation2 + $0x8] sm:$0xff] }
  0x78   : > { %511 = vmatpush.msra.mxu0 %v498_v7  ;;  %1407 = vmatpush.msra.mxu1 %v498_v7  ;;  %v483_v63 = vld [vmem:[#allocation2 + $0x10] sm:$0xff]  ;;  %v487_v0 = vld [vmem:[#allocation2 + $0x78] sm:$0xff]  ;;  %v480_v6 = vld [vmem:[#allocation2 + $0x48] sm:$0xff] }
  0x79   : > { %1411 = vmatpush.msra.mxu2 %v497_v8  ;;  %1412 = vmatpush.msra.mxu3 %v497_v8  ;;  %v476_v5 = vld [vmem:[#allocation2 + $0x18] sm:$0xff] }
  0x7a   : > { %512 = vmatpush.msra.mxu0 %v497_v8  ;;  %1410 = vmatpush.msra.mxu1 %v497_v8 }
  0x7b   : > { %1414 = vmatpush.msra.mxu2 %v496_v9  ;;  %1415 = vmatpush.msra.mxu3 %v496_v9 }
  0x7c   : > { %513 = vmatpush.msra.mxu0 %v496_v9  ;;  %1413 = vmatpush.msra.mxu1 %v496_v9 }
  0x7d   : > { %1417 = vmatpush.msra.mxu2 %v495_v10  ;;  %1418 = vmatpush.msra.mxu3 %v495_v10 }
  0x7e   : > { %514 = vmatpush.msra.mxu0 %v495_v10  ;;  %1416 = vmatpush.msra.mxu1 %v495_v10 }
  0x7f   : > { %1420 = vmatpush.msra.mxu2 %v494_v11  ;;  %1421 = vmatpush.msra.mxu3 %v494_v11 }
  0x80   : > { %515 = vmatpush.msra.mxu0 %v494_v11  ;;  %1419 = vmatpush.msra.mxu1 %v494_v11  ;;  %v484_v11 = vld [vmem:[#allocation2 + $0x38] sm:$0xff] }
  0x81   : > { %1423 = vmatpush.msra.mxu2 %v493_v12  ;;  %1424 = vmatpush.msra.mxu3 %v493_v12 }
  0x82   : > { %516 = vmatpush.msra.mxu0 %v493_v12  ;;  %1422 = vmatpush.msra.mxu1 %v493_v12  ;;  %v488_v12 = vld [vmem:[#allocation2 + $0x28] sm:$0xff] }
  0x83   : > { %1426 = vmatpush.msra.mxu2 %v492_v13  ;;  %1427 = vmatpush.msra.mxu3 %v492_v13 }
  0x84   : > { %517 = vmatpush.msra.mxu0 %v492_v13  ;;  %1425 = vmatpush.msra.mxu1 %v492_v13 }
  0x85   : > { %1429 = vmatpush.msra.mxu2 %v491_v14  ;;  %1430 = vmatpush.msra.mxu3 %v491_v14 }
  0x86   : > { %518 = vmatpush.msra.mxu0 %v491_v14  ;;  %1428 = vmatpush.msra.mxu1 %v491_v14 }
  0x87   : > { %1432 = vmatpush.msra.mxu2 %v490_v15  ;;  %1433 = vmatpush.msra.mxu3 %v490_v15 }
  0x88   : > { %519 = vmatpush.msra.mxu0 %v490_v15  ;;  %1431 = vmatpush.msra.mxu1 %v490_v15 }
  0x89   : > { %1435 = vmatpush.msra.mxu2 %v489_v16  ;;  %1436 = vmatpush.msra.mxu3 %v489_v16 }
  0x8a   : > { %545 = vmatmul.f32.vlgmr.msra.gmra.mxu2 %v465_v17  ;;  %557 = vmatmul.f32.vlgmr.msra.gmra.mxu3 %v469_v18 }
  0x8b   : > { %520 = vmatpush.msra.mxu0 %v489_v16  ;;  %1434 = vmatpush.msra.mxu1 %v489_v16 }
  0x8c   : > { %521 = vmatmul.f32.vlgmr.msra.gmra.mxu0 %v457_v19  ;;  %533 = vmatmul.f32.vlgmr.msra.gmra.mxu1 %v461_v20 }
  0x92   : > { %548 = vmatmul.f32.gmra.mxu2 %v466_v21  ;;  %560 = vmatmul.f32.gmra.mxu3 %v470_v22 }
  0x94   : > { %524 = vmatmul.f32.gmra.mxu0 %v458_v23  ;;  %536 = vmatmul.f32.gmra.mxu1 %v462_v24 }
  0x9a   : > { %551 = vmatmul.f32.gmra.mxu2 %v467_v25  ;;  %563 = vmatmul.f32.gmra.mxu3 %v471_v26 }
  0x9c   : > { %527 = vmatmul.f32.gmra.mxu0 %v459_v27  ;;  %539 = vmatmul.f32.gmra.mxu1 %v463_v28 }
  0xa2   : > { %554 = vmatmul.f32.gmra.mxu2 %v468_v29  ;;  %566 = vmatmul.f32.gmra.mxu3 %v472_v30 }
  0xa4   : > { %530 = vmatmul.f32.gmra.mxu0 %v460_v31  ;;  %542 = vmatmul.f32.gmra.mxu1 %v464_v32 }
 0x109   : > { %v522_v35 = vpop.f32.mrf.mxu0  ;;  %v534_v36 = vpop.f32.mrf.mxu1 }
 0x10a   : > { %v570_v37 = vadd.f32 %v522_v35, %v473_v33  ;;  %v574_v38 = vadd.f32 %v534_v36, %v477_v34 }
 0x10c   : > { %586 = vst [vmem:[#allocation2 + $0x30] sm:$0xff] %v570_v37 }
 0x10d   : > { %590 = vst [vmem:[#allocation2 + $0x50] sm:$0xff] %v574_v38  ;;  %v546_v41 = vpop.f32.mrf.mxu2  ;;  %v558_v42 = vpop.f32.mrf.mxu3 }
 0x10e   : > { %v578_v43 = vadd.f32 %v546_v41, %v481_v39  ;;  %v582_v44 = vadd.f32 %v558_v42, %v485_v40 }
 0x110   : > { %594 = vst [vmem:[#allocation2 + $0x40] sm:$0xff] %v578_v43 }
 0x111   : > { %598 = vst [vmem:[#allocation2 + $0x60] sm:$0xff] %v582_v44  ;;  %v525_v47 = vpop.f32.mrf.mxu0  ;;  %v537_v48 = vpop.f32.mrf.mxu1 }
 0x112   : > { %v571_v49 = vadd.f32 %v525_v47, %v474_v45  ;;  %v575_v50 = vadd.f32 %v537_v48, %v478_v46 }
 0x114   : > { %587 = vst [vmem:[#allocation2] sm:$0xff] %v571_v49 }
 0x115   : > { %591 = vst [vmem:[#allocation2 + $0x68] sm:$0xff] %v575_v50  ;;  %v549_v53 = vpop.f32.mrf.mxu2  ;;  %v561_v54 = vpop.f32.mrf.mxu3 }
 0x116   : > { %v579_v55 = vadd.f32 %v549_v53, %v482_v51  ;;  %v583_v56 = vadd.f32 %v561_v54, %v486_v52 }
 0x118   : > { %595 = vst [vmem:[#allocation2 + $0x20] sm:$0xff] %v579_v55 }
 0x119   : > { %599 = vst [vmem:[#allocation2 + $0x70] sm:$0xff] %v583_v56  ;;  %v528_v59 = vpop.f32.mrf.mxu0  ;;  %v540_v60 = vpop.f32.mrf.mxu1 }
 0x11a   : > { %v572_v61 = vadd.f32 %v528_v59, %v475_v57  ;;  %v576_v62 = vadd.f32 %v540_v60, %v479_v58 }
 0x11c   : > { %588 = vst [vmem:[#allocation2 + $0x58] sm:$0xff] %v572_v61 }
 0x11d   : > { %592 = vst [vmem:[#allocation2 + $0x8] sm:$0xff] %v576_v62  ;;  %v552_v1 = vpop.f32.mrf.mxu2  ;;  %v564_v2 = vpop.f32.mrf.mxu3 }
 0x11e   : > { %v580_v3 = vadd.f32 %v552_v1, %v483_v63  ;;  %v584_v4 = vadd.f32 %v564_v2, %v487_v0 }
 0x120   : > { %596 = vst [vmem:[#allocation2 + $0x10] sm:$0xff] %v580_v3 }
 0x121   : > { %600 = vst [vmem:[#allocation2 + $0x78] sm:$0xff] %v584_v4  ;;  %v531_v7 = vpop.f32.mrf.mxu0  ;;  %v543_v8 = vpop.f32.mrf.mxu1 }
 0x122   : > { %v573_v9 = vadd.f32 %v531_v7, %v476_v5  ;;  %v577_v10 = vadd.f32 %v543_v8, %v480_v6 }
 0x124   : > { %589 = vst [vmem:[#allocation2 + $0x18] sm:$0xff] %v573_v9 }
 0x125   : > { %593 = vst [vmem:[#allocation2 + $0x48] sm:$0xff] %v577_v10  ;;  %v555_v13 = vpop.f32.mrf.mxu2  ;;  %v567_v14 = vpop.f32.mrf.mxu3  ;;  %605 = sbr.rel (%p1380_p6) target bundleno = 631 (0x277), region = 72 }
 0x126   : > { %v581_v15 = vadd.f32 %v555_v13, %v484_v11  ;;  %v585_v16 = vadd.f32 %v567_v14, %v488_v12 }
 0x128   : > { %597 = vst [vmem:[#allocation2 + $0x38] sm:$0xff] %v581_v15 }
 0x129   : > { %601 = vst [vmem:[#allocation2 + $0x28] sm:$0xff] %v585_v16 }
 0x12a   : > { %v631_v17 = vld [vmem:[%s2145_s12 + $0x48] sm:$0xff]  ;;  %v2185_v18 = vld [vmem:[%s2145_s12 + $0x40] sm:$0xff]  ;;  %v2188_v19 = vld [vmem:[%s2145_s12 + $0x50] sm:$0xff]  ;;  %v1902_v20 = vmov 0  }
 0x12b   : > { %1605 = vset.pattern.permute.xlu1 %v1902_v20  ;;  %1604 = vset.pattern.permute.xlu0 %v1902_v20  ;;  %1608 = vrcp.f32 %v631_v17  ;;  %v773_v21 = vand.u32 2147483647, %v631_v17  ;;  %v775_v22 = vand.u32 2147483648, %v631_v17  ;;  %v2192_v23 = vld [vmem:[%s2145_s12 + $0x8] sm:$0xff]  ;;  %v759_v24 = vand.u32 2147483647, %v2185_v18 }
 0x12c   : > { %1610 = vrcp.f32 %v2185_v18  ;;  %1606 = vset.pattern.permute.xlu2 %v1902_v20  ;;  %v761_v25 = vand.u32 2147483648, %v2185_v18  ;;  %v2198_v26 = vld [vmem:[%s2145_s12] sm:$0xff]  ;;  %vm769_vm0 = vweird.f32 %v631_v17  ;;  %v787_v27 = vand.u32 2147483647, %v2188_v19  ;;  %v2206_v30 = vld [vmem:[%s2145_s12 + $0x10] sm:$0xff]  ;;  %v2228_v42 = vld [vmem:[%s2145_s12 + $0x18] sm:$0xff] }
 0x12d   : > { %1612 = vrcp.f32 %v2188_v19  ;;  %vm755_vm1 = vweird.f32 %v2185_v18  ;;  %v789_v28 = vand.u32 2147483648, %v2188_v19  ;;  %v663_v29 = vand.u32 2147483648, %v2192_v23  ;;  %v2330_v31 = vld [vmem:[%s2145_s12 + $0x60] sm:$0xff]  ;;  %v1005_v1 = vld [vmem:[#allocation9 + $0x78] sm:$0xff]  ;;  %v987_v14 = vld [vmem:[#allocation8 + $0x68] sm:$0xff] }
 0x12e   : > { %1614 = vrcp.f32 %v2192_v23  ;;  %vm2208_vm2 = vcmp.eq.f32.partialorder %v773_v21, 8.507059e+37  ;;  %v776_v32 = vor.u32 1.1754944e-38, %v775_v22  ;;  %vm783_vm3 = vweird.f32 %v2188_v19  ;;  %v2312_v22 = vld [vmem:[%s2145_s12 + $0x58] sm:$0xff]  ;;  %1437 = vmatpush.msra.mxu2 %v1005_v1  ;;  %1006 = vmatpush.msra.mxu0 %v1005_v1 }
 0x12f   : > { %1616 = vrcp.f32 %v2198_v26  ;;  %vm2214_vm4 = vcmp.eq.f32.partialorder %v759_v24, 8.507059e+37  ;;  %v762_v35 = vor.u32 1.1754944e-38, %v761_v25  ;;  %vm657_vm5 = vweird.f32 %v2192_v23 }
 0x130   : > { %v661_v36 = vand.u32 2147483647, %v2192_v23  ;;  %v649_v37 = vand.u32 2147483648, %v2198_v26  ;;  %vm2221_vm6 = vcmp.eq.f32.partialorder %v787_v27, 8.507059e+37  ;;  %v647_v41 = vand.u32 2147483647, %v2198_v26 }
 0x131   : > { %v1609_v33 = vpop.eup %1608  ;;  %1618 = vrcp.f32 %v2206_v30  ;;  %v790_v45 = vor.u32 1.1754944e-38, %v789_v28  ;;  %v2231_v46 = vor.u32 1.1754944e-38, %v663_v29  ;;  %vm643_vm7 = vweird.f32 %v2198_v26 }
 0x132   : > { %v1611_v38 = vpop.eup %1610  ;;  %v765_v39 = vmul.f32 %v1609_v33, %v631_v17  ;;  %vm770_vm8 = vweird.f32 %v1609_v33  ;;  %v2238_v51 = vor.u32 1.1754944e-38, %v649_v37  ;;  %1620 = vrcp.f32 %v2228_v42 }
 0x133   : > { %v1613_v43 = vpop.eup %1612  ;;  %v751_v44 = vmul.f32 %v1611_v38, %v2185_v18  ;;  %vm756_vm10 = vweird.f32 %v1611_v38  ;;  %vm2245_vm12 = vcmp.eq.f32.partialorder %v661_v36, 8.507059e+37  ;;  %vm2249_vm13 = vcmp.eq.f32.partialorder %v647_v41, 8.507059e+37  ;;  %vm2255_vm14 = vmor %vm769_vm0, %vm770_vm8  ;;  %v2340_v36 = vld [vmem:[%s2145_s12 + $0x68] sm:$0xff] }
 0x134   : > { %v766_v47 = vsub.f32 1.0, %v765_v39  ;;  %v779_v48 = vmul.f32 %v1613_v43, %v2188_v19  ;;  %v2236_v49 = vpop.eup %1614  ;;  %vm784_vm11 = vweird.f32 %v1613_v43  ;;  %v675_v61 = vand.u32 2147483647, %v2206_v30  ;;  %vm2266_vm15 = vmor %vm755_vm1, %vm756_vm10 }
 0x135   : > { %v752_v50 = vsub.f32 1.0, %v751_v44  ;;  %v2241_v52 = vpop.eup %1616  ;;  %v653_v55 = vmul.f32 %v2236_v49, %v2192_v23  ;;  %v677_v62 = vand.u32 2147483648, %v2206_v30  ;;  %vm658_vm0 = vweird.f32 %v2236_v49  ;;  %vm2274_vm8 = vmor %vm783_vm3, %vm784_vm11 }
 0x136   : > { %v767_v53 = vmul.f32 %v1609_v33, %v766_v47  ;;  %v780_v54 = vsub.f32 1.0, %v779_v48  ;;  %v639_v60 = vmul.f32 %v2241_v52, %v2198_v26  ;;  %vm644_vm9 = vweird.f32 %v2241_v52  ;;  %vm2291_vm3 = vmor %vm657_vm5, %vm658_vm0 }
 0x137   : > { %v753_v59 = vmul.f32 %v1611_v38, %v752_v50  ;;  %v1619_v63 = vpop.eup %1618  ;;  %v654_v3 = vsub.f32 1.0, %v653_v55  ;;  %vm2736_vm5 = vweird.f32 %v2206_v30  ;;  %v678_v28 = vor.u32 1.1754944e-38, %v677_v62  ;;  %v999_v55 = vld [vmem:[#allocation9 + $0x48] sm:$0xff] }
 0x138   : > { %v768_v0 = vadd.f32 %v1609_v33, %v767_v53  ;;  %v781_v2 = vmul.f32 %v1613_v43, %v780_v54  ;;  %v640_v6 = vsub.f32 1.0, %v639_v60  ;;  %v667_v7 = vmul.f32 %v1619_v63, %v2206_v30  ;;  %v2283_v11 = vpop.eup %1620 }
 0x139   : > { %v754_v4 = vadd.f32 %v1611_v38, %v753_v59  ;;  %v655_v10 = vmul.f32 %v2236_v49, %v654_v3  ;;  %vm672_vm1 = vweird.f32 %v1619_v63  ;;  %v681_v21 = vmul.f32 %v2283_v11, %v2228_v42  ;;  %v1004_v3 = vld [vmem:[#allocation9 + $0x70] sm:$0xff] }
 0x13a   : > { %v772_v8 = vsel %vm2255_vm14, %v1609_v33, %v768_v0  ;;  %v782_v9 = vadd.f32 %v1613_v43, %v781_v2  ;;  %v641_v15 = vmul.f32 %v2241_v52, %v640_v6  ;;  %v668_v16 = vsub.f32 1.0, %v667_v7  ;;  %v989_v2 = vld [vmem:[#allocation8 + $0x78] sm:$0xff]  ;;  %1438 = vmatpush.msra.mxu2 %v1004_v3  ;;  %1007 = vmatpush.msra.mxu0 %v1004_v3 }
 0x13b   : > { %v777_v12 = vsel %vm2208_vm2, %v776_v32, %v772_v8  ;;  %v758_v13 = vsel %vm2266_vm15, %v1611_v38, %v754_v4  ;;  %v656_v19 = vadd.f32 %v2236_v49, %v655_v10  ;;  %vm2305_vm2 = vmor %vm643_vm7, %vm644_vm9  ;;  %v682_v29 = vsub.f32 1.0, %v681_v21  ;;  %1453 = vmatpush.msra.mxu3 %v989_v2  ;;  %v988_v8 = vld [vmem:[#allocation8 + $0x70] sm:$0xff]  ;;  %1071 = vmatpush.msra.mxu1 %v989_v2  ;;  %v629_v2 = vld [vmem:[%s2145_s12 + $0x38] sm:$0xff] }
 0x13c   : > { %909 = vperm.xlu1 %1605, %v777_v12   ;;  %v763_v17 = vsel %vm2214_vm4, %v762_v35, %v758_v13  ;;  %v786_v18 = vsel %vm2274_vm8, %v1613_v43, %v782_v9  ;;  %v642_v24 = vadd.f32 %v2241_v52, %v641_v15  ;;  %v669_v25 = vmul.f32 %v1619_v63, %v668_v16  ;;  %vm2324_vm7 = vmor %vm2736_vm5, %vm672_vm1  ;;  %v2419_v12 = vld [vmem:[%s2145_s12 + $0x70] sm:$0xff]  ;;  %v1003_v13 = vld [vmem:[#allocation9 + $0x68] sm:$0xff] }
 0x13d   : > { %904 = vperm.xlu0 %1604, %v763_v17   ;;  %v791_v23 = vsel %vm2221_vm6, %v790_v45, %v786_v18  ;;  %vm685_vm4 = vweird.f32 %v2228_v42  ;;  %v660_v26 = vsel %vm2291_vm3, %v2236_v49, %v656_v19  ;;  %vm686_vm6 = vweird.f32 %v2283_v11  ;;  %1454 = vmatpush.msra.mxu3 %v988_v8 }
 0x13e   : > { %914 = vperm.xlu2 %1606, %v791_v23   ;;  %v646_v32 = vsel %vm2305_vm2, %v2241_v52, %v642_v24  ;;  %v670_v33 = vadd.f32 %v1619_v63, %v669_v25  ;;  %v691_v34 = vand.u32 2147483648, %v2228_v42  ;;  %1622 = vrcp.f32 %v2312_v22  ;;  %vm2352_vm10 = vmor %vm685_vm4, %vm686_vm6  ;;  %v1002_v23 = vld [vmem:[#allocation9 + $0x60] sm:$0xff]  ;;  %1439 = vmatpush.msra.mxu2 %v1003_v13 }
 0x13f   : > { %vm676_vm9 = vcmp.eq.f32.partialorder %v675_v61, 8.507059e+37  ;;  %v683_v30 = vmul.f32 %v2283_v11, %v682_v29  ;;  %v689_v35 = vand.u32 2147483647, %v2228_v42  ;;  %v665_v37 = vsel %vm2245_vm12, %v2231_v46, %v660_v26  ;;  %v2362_v46 = vld [vmem:[%s2145_s12 + $0x20] sm:$0xff]  ;;  %v2398_v61 = vld [vmem:[%s2145_s12 + $0x30] sm:$0xff]  ;;  %1455 = vmatpush.msra.mxu3 %v987_v14  ;;  %1072 = vmatpush.msra.mxu1 %v988_v8 }
 0x140   : > { %v651_v38 = vsel %vm2249_vm13, %v2238_v51, %v646_v32  ;;  %v674_v39 = vsel %vm2324_vm7, %v1619_v63, %v670_v33  ;;  %1624 = vrcp.f32 %v2330_v31  ;;  %v801_v43 = vand.u32 2147483647, %v2312_v22  ;;  %v2371_v51 = vld [vmem:[%s2145_s12 + $0x28] sm:$0xff]  ;;  %v2439_v24 = vld [vmem:[#allocation8 + $0x60] sm:$0xff]  ;;  %v1001_v33 = vld [vmem:[#allocation9 + $0x58] sm:$0xff]  ;;  %1008 = vmatpush.msra.mxu0 %v1003_v13  ;;  %1440 = vmatpush.msra.mxu2 %v1002_v23 }
 0x141   : > { %v684_v41 = vadd.f32 %v2283_v11, %v683_v30  ;;  %v803_v44 = vand.u32 2147483648, %v2312_v22  ;;  %v815_v45 = vand.u32 2147483647, %v2330_v31  ;;  %v679_v47 = vsel %vm676_vm9, %v678_v28, %v674_v39  ;;  %1456 = vmatpush.msra.mxu3 %v2439_v24  ;;  %1073 = vmatpush.msra.mxu1 %v987_v14 }
 0x142   : > { %v692_v48 = vor.u32 1.1754944e-38, %v691_v34  ;;  %v817_v42 = vand.u32 2147483648, %v2330_v31  ;;  %1626 = vrcp.f32 %v2340_v36  ;;  %vm690_vm11 = vcmp.eq.f32.partialorder %v689_v35, 8.507059e+37  ;;  %v985_v34 = vld [vmem:[#allocation8 + $0x58] sm:$0xff]  ;;  %1441 = vmatpush.msra.mxu2 %v1001_v33  ;;  %1009 = vmatpush.msra.mxu0 %v1002_v23 }
 0x143   : > { %v688_v49 = vsel %vm2352_vm10, %v2283_v11, %v684_v41  ;;  %v829_v50 = vand.u32 2147483647, %v2340_v36  ;;  %vm797_vm12 = vweird.f32 %v2312_v22  ;;  %vm811_vm13 = vweird.f32 %v2330_v31  ;;  %1457 = vmatpush.msra.mxu3 %v985_v34  ;;  %1074 = vmatpush.msra.mxu1 %v2439_v24 }
 0x144   : > { %869 = vperm.xlu1 %1605, %v665_v37   ;;  %v2373_v52 = vpop.eup %1622  ;;  %v831_v53 = vand.u32 2147483648, %v2340_v36  ;;  %1628 = vrcp.f32 %v2362_v46  ;;  %vm2381_vm14 = vcmp.eq.f32.partialorder %v801_v43, 8.507059e+37  ;;  %v2385_v56 = vor.u32 1.1754944e-38, %v803_v44  ;;  %v1000_v44 = vld [vmem:[#allocation9 + $0x50] sm:$0xff]  ;;  %1010 = vmatpush.msra.mxu0 %v1001_v33 }
 0x145   : > { %864 = vperm.xlu0 %1604, %v651_v38   ;;  %v793_v54 = vmul.f32 %v2373_v52, %v2312_v22  ;;  %vm2387_vm15 = vcmp.eq.f32.partialorder %v815_v45, 8.507059e+37  ;;  %v693_v59 = vsel %vm690_vm11, %v692_v48, %v688_v49  ;;  %v2393_v60 = vor.u32 1.1754944e-38, %v817_v42  ;;  %v984_v45 = vld [vmem:[#allocation8 + $0x50] sm:$0xff]  ;;  %1442 = vmatpush.msra.mxu2 %v1000_v44  ;;  %v979_v42 = vld [vmem:[#allocation8 + $0x28] sm:$0xff] }
 0x146   : > { %874 = vperm.xlu2 %1606, %v679_v47   ;;  %v2391_v58 = vpop.eup %1624  ;;  %vm825_vm0 = vweird.f32 %v2340_v36  ;;  %1630 = vrcp.f32 %v2371_v51  ;;  %vm798_vm8 = vweird.f32 %v2373_v52  ;;  %vm2403_vm1 = vcmp.eq.f32.partialorder %v829_v50, 8.507059e+37  ;;  %1458 = vmatpush.msra.mxu3 %v984_v45 }
 0x147   : > { %v794_v62 = vsub.f32 1.0, %v793_v54  ;;  %v807_v63 = vmul.f32 %v2391_v58, %v2330_v31  ;;  %v2409_v5 = vor.u32 1.1754944e-38, %v831_v53  ;;  %vm699_vm3 = vweird.f32 %v2362_v46  ;;  %vm2427_vm4 = vmor %vm797_vm12, %vm798_vm8  ;;  %v2509_v54 = vld [vmem:[%s2145_s12 + $0x78] sm:$0xff]  ;;  %1443 = vmatpush.msra.mxu2 %v999_v55  ;;  %1075 = vmatpush.msra.mxu1 %v985_v34 }
 0x148   : > { %v2407_v4 = vpop.eup %1626  ;;  %v703_v6 = vand.u32 2147483647, %v2362_v46  ;;  %v705_v7 = vand.u32 2147483648, %v2362_v46  ;;  %vm812_vm2 = vweird.f32 %v2391_v58  ;;  %v717_v17 = vand.u32 2147483647, %v2371_v51  ;;  %1011 = vmatpush.msra.mxu0 %v1000_v44  ;;  %v981_v44 = vld [vmem:[#allocation8 + $0x38] sm:$0xff] }
 0x149   : > { %v795_v9 = vmul.f32 %v2373_v52, %v794_v62  ;;  %v808_v10 = vsub.f32 1.0, %v807_v63  ;;  %v821_v11 = vmul.f32 %v2407_v4, %v2340_v36  ;;  %vm826_vm5 = vweird.f32 %v2407_v4  ;;  %vm2447_vm7 = vmor %vm811_vm13, %vm812_vm2  ;;  %1076 = vmatpush.msra.mxu1 %v984_v45  ;;  %v996_v45 = vld [vmem:[#allocation9 + $0x30] sm:$0xff]  ;;  %v959_v63 = vld [vmem:[%s2121_s22 + $0x8] sm:$0xff] }
 0x14a   : > { %v2421_v15 = vpop.eup %1628  ;;  %v719_v18 = vand.u32 2147483648, %v2371_v51  ;;  %1632 = vrcp.f32 %v2398_v61  ;;  %vm2452_vm9 = vcmp.eq.f32.partialorder %v703_v6, 8.507059e+37  ;;  %vm713_vm10 = vweird.f32 %v2371_v51  ;;  %vm2470_vm11 = vmor %vm825_vm0, %vm826_vm5  ;;  %1012 = vmatpush.msra.mxu0 %v999_v55  ;;  %v991_v55 = vld [vmem:[#allocation9 + $0x8] sm:$0xff] }
 0x14b   : > { %v796_v19 = vadd.f32 %v2373_v52, %v795_v9  ;;  %v809_v20 = vmul.f32 %v2391_v58, %v808_v10  ;;  %v822_v21 = vsub.f32 1.0, %v821_v11  ;;  %v695_v22 = vmul.f32 %v2421_v15, %v2362_v46  ;;  %v606_v9 = vld [vmem:[#allocation2 + $0x30] sm:$0xff] }
 0x14c   : > { %879 = vperm.xlu1 %1605, %v693_v59   ;;  %v2441_v25 = vpop.eup %1630  ;;  %vm700_vm6 = vweird.f32 %v2421_v15  ;;  %1634 = vrcp.f32 %v2419_v12  ;;  %v706_v37 = vor.u32 1.1754944e-38, %v705_v7  ;;  %vm2476_vm12 = vcmp.eq.f32.partialorder %v717_v17, 8.507059e+37 }
 0x14d   : > { %v800_v28 = vsel %vm2427_vm4, %v2373_v52, %v796_v19  ;;  %v810_v29 = vadd.f32 %v2391_v58, %v809_v20  ;;  %v823_v31 = vmul.f32 %v2407_v4, %v822_v21  ;;  %v696_v32 = vsub.f32 1.0, %v695_v22  ;;  %vm2495_vm13 = vmor %vm699_vm3, %vm700_vm6 }
 0x14e   : > { %v805_v30 = vsel %vm2381_vm14, %v2385_v56, %v800_v28  ;;  %v709_v38 = vmul.f32 %v2441_v25, %v2371_v51  ;;  %v720_v43 = vor.u32 1.1754944e-38, %v719_v18  ;;  %vm714_vm14 = vweird.f32 %v2441_v25  ;;  %v983_v56 = vld [vmem:[#allocation8 + $0x48] sm:$0xff] }
 0x14f   : > { %919 = vperm.xlu0 %1604, %v805_v30   ;;  %v814_v36 = vsel %vm2447_vm7, %v2391_v58, %v810_v29  ;;  %v824_v40 = vadd.f32 %v2407_v4, %v823_v31  ;;  %v697_v41 = vmul.f32 %v2421_v15, %v696_v32  ;;  %vm727_vm0 = vweird.f32 %v2398_v61  ;;  %vm2524_vm8 = vmor %vm713_vm10, %vm714_vm14  ;;  %1459 = vmatpush.msra.mxu3 %v983_v56 }
 0x150   : > { %v2486_v47 = vpop.eup %1632  ;;  %v819_v48 = vsel %vm2387_vm15, %v2393_v60, %v814_v36  ;;  %v710_v49 = vsub.f32 1.0, %v709_v38  ;;  %v731_v53 = vand.u32 2147483647, %v2398_v61  ;;  %v733_v60 = vand.u32 2147483648, %v2398_v61  ;;  %1077 = vmatpush.msra.mxu1 %v983_v56  ;;  %v975_v56 = vld [vmem:[#allocation8 + $0x8] sm:$0xff] }
 0x151   : > { %924 = vperm.xlu2 %1606, %v819_v48   ;;  %v828_v50 = vsel %vm2470_vm11, %v2407_v4, %v824_v40  ;;  %v698_v52 = vadd.f32 %v2421_v15, %v697_v41  ;;  %v723_v46 = vmul.f32 %v2486_v47, %v2398_v61  ;;  %vm839_vm15 = vweird.f32 %v2419_v12  ;;  %v998_v40 = vld [vmem:[#allocation9 + $0x40] sm:$0xff]  ;;  %v995_v48 = vld [vmem:[#allocation9 + $0x28] sm:$0xff] }
 0x152   : > { %v1635_v57 = vpop.eup %1634  ;;  %v833_v58 = vsel %vm2403_vm1, %v2409_v5, %v828_v50  ;;  %v711_v59 = vmul.f32 %v2441_v25, %v710_v49  ;;  %vm728_vm1 = vweird.f32 %v2486_v47  ;;  %v845_v5 = vand.u32 2147483648, %v2419_v12  ;;  %v982_v41 = vld [vmem:[#allocation8 + $0x40] sm:$0xff]  ;;  %1444 = vmatpush.msra.mxu2 %v998_v40  ;;  %1013 = vmatpush.msra.mxu0 %v998_v40  ;;  %v610_v40 = vld [vmem:[#allocation2 + $0x50] sm:$0xff] }
 0x153   : > { %v702_v62 = vsel %vm2495_vm13, %v2421_v15, %v698_v52  ;;  %v724_v0 = vsub.f32 1.0, %v723_v46  ;;  %v835_v1 = vmul.f32 %v1635_v57, %v2419_v12  ;;  %1636 = vrcp.f32 %v2509_v54  ;;  %vm2546_vm2 = vmor %vm727_vm0, %vm728_vm1  ;;  %1460 = vmatpush.msra.mxu3 %v982_v41  ;;  %1078 = vmatpush.msra.mxu1 %v982_v41  ;;  %v994_v49 = vld [vmem:[#allocation9 + $0x20] sm:$0xff]  ;;  %v993_v52 = vld [vmem:[#allocation9 + $0x18] sm:$0xff] }
 0x154   : > { %929 = vperm.xlu1 %1605, %v833_v58   ;;  %v707_v3 = vsel %vm2452_vm9, %v706_v37, %v702_v62  ;;  %v712_v4 = vadd.f32 %v2441_v25, %v711_v59  ;;  %vm840_vm3 = vweird.f32 %v1635_v57  ;;  %v843_v7 = vand.u32 2147483647, %v2419_v12  ;;  %v978_v50 = vld [vmem:[#allocation8 + $0x20] sm:$0xff]  ;;  %v977_v46 = vld [vmem:[#allocation8 + $0x18] sm:$0xff]  ;;  %v967_v62 = vld [vmem:[%s2121_s22 + $0x48] sm:$0xff] }
 0x155   : > { %v725_v51 = vmul.f32 %v2486_v47, %v724_v0  ;;  %v836_v6 = vsub.f32 1.0, %v835_v1  ;;  %v734_v10 = vor.u32 1.1754944e-38, %v733_v60  ;;  %1638 = vrcp.f32 %v629_v2  ;;  %vm2555_vm5 = vmor %vm839_vm15, %vm840_vm3  ;;  %1461 = vmatpush.msra.mxu3 %v981_v44  ;;  %1079 = vmatpush.msra.mxu1 %v981_v44  ;;  %v974_v58 = vld [vmem:[#allocation8] sm:$0xff]  ;;  %v968_v0 = vld [vmem:[%s2121_s22 + $0x50] sm:$0xff] }
 0x156   : > { %v716_v8 = vsel %vm2524_vm8, %v2441_v25, %v712_v4  ;;  %vm732_vm4 = vcmp.eq.f32.partialorder %v731_v53, 8.507059e+37  ;;  %v846_v61 = vor.u32 1.1754944e-38, %v845_v5  ;;  %vm844_vm7 = vcmp.eq.f32.partialorder %v843_v7, 8.507059e+37  ;;  %v992_v53 = vld [vmem:[#allocation9 + $0x10] sm:$0xff]  ;;  %v966_v59 = vld [vmem:[%s2121_s22 + $0x40] sm:$0xff]  ;;  %v961_v7 = vld [vmem:[%s2121_s22 + $0x18] sm:$0xff] }
 0x157   : > { %884 = vperm.xlu0 %1604, %v707_v3   ;;  %v721_v11 = vsel %vm2476_vm12, %v720_v43, %v716_v8  ;;  %v726_v13 = vadd.f32 %v2486_v47, %v725_v51  ;;  %v837_v14 = vmul.f32 %v1635_v57, %v836_v6  ;;  %vm853_vm6 = vweird.f32 %v2509_v54  ;;  %v997_v43 = vld [vmem:[#allocation9 + $0x38] sm:$0xff]  ;;  %v958_v60 = vld [vmem:[%s2121_s22] sm:$0xff]  ;;  %v960_v1 = vld [vmem:[%s2121_s22 + $0x10] sm:$0xff] }
 0x158   : > { %v859_v23 = vand.u32 2147483648, %v2509_v54  ;;  %v857_v25 = vand.u32 2147483647, %v2509_v54  ;;  %vm741_vm10 = vweird.f32 %v629_v2  ;;  %v747_v27 = vand.u32 2147483648, %v629_v2  ;;  %1445 = vmatpush.msra.mxu2 %v997_v43  ;;  %1014 = vmatpush.msra.mxu0 %v997_v43  ;;  %v614_v3 = vld [vmem:[#allocation2 + $0x40] sm:$0xff]  ;;  %v616_v15 = vld [vmem:[#allocation2 + $0x10] sm:$0xff] }
 0x159   : > { %889 = vperm.xlu2 %1606, %v721_v11   ;;  %v730_v16 = vsel %vm2546_vm2, %v2486_v47, %v726_v13  ;;  %v838_v17 = vadd.f32 %v1635_v57, %v837_v14  ;;  %v1637_v18 = vpop.eup %1636  ;;  %v745_v31 = vand.u32 2147483647, %v629_v2  ;;  %v980_v47 = vld [vmem:[#allocation8 + $0x30] sm:$0xff]  ;;  %v615_v6 = vld [vmem:[#allocation2 + $0x20] sm:$0xff] }
 0x15a   : > { %v735_v19 = vsel %vm732_vm4, %v734_v10, %v730_v16  ;;  %v849_v20 = vmul.f32 %v1637_v18, %v2509_v54  ;;  %vm854_vm9 = vweird.f32 %v1637_v18  ;;  %v860_v32 = vor.u32 1.1754944e-38, %v859_v23  ;;  %1446 = vmatpush.msra.mxu2 %v996_v45  ;;  %1462 = vmatpush.msra.mxu3 %v980_v47  ;;  %v976_v54 = vld [vmem:[#allocation8 + $0x10] sm:$0xff]  ;;  %v970_v8 = vld [vmem:[%s2121_s22 + $0x60] sm:$0xff]  ;;  %v971_v16 = vld [vmem:[%s2121_s22 + $0x68] sm:$0xff] }
 0x15b   : > { %v842_v12 = vsel %vm2555_vm5, %v1635_v57, %v838_v17  ;;  %v1639_v21 = vpop.eup %1638  ;;  %vm855_vm12 = vmor %vm853_vm6, %vm854_vm9  ;;  %vm858_vm13 = vcmp.eq.f32.partialorder %v857_v25, 8.507059e+37  ;;  %v748_v30 = vor.u32 1.1754944e-38, %v747_v27  ;;  %vm746_vm0 = vcmp.eq.f32.partialorder %v745_v31, 8.507059e+37  ;;  %1015 = vmatpush.msra.mxu0 %v996_v45  ;;  %1080 = vmatpush.msra.mxu1 %v980_v47  ;;  %v990_v57 = vld [vmem:[#allocation9] sm:$0xff]  ;;  %v608_v23 = vld [vmem:[#allocation2 + $0x58] sm:$0xff] }
 0x15c   : > { %894 = vperm.xlu1 %1605, %v735_v19   ;;  %v847_v22 = vsel %vm844_vm7, %v846_v61, %v842_v12  ;;  %v850_v24 = vsub.f32 1.0, %v849_v20  ;;  %v737_v26 = vmul.f32 %v1639_v21, %v629_v2  ;;  %vm742_vm11 = vweird.f32 %v1639_v21  ;;  %1447 = vmatpush.msra.mxu2 %v995_v48  ;;  %v969_v2 = vld [vmem:[%s2121_s22 + $0x58] sm:$0xff]  ;;  %v962_v61 = vld [vmem:[%s2121_s22 + $0x20] sm:$0xff]  ;;  %v963_v20 = vld [vmem:[%s2121_s22 + $0x28] sm:$0xff] }
 0x15d   : > { %vm743_vm14 = vmor %vm741_vm10, %vm742_vm11  ;;  %1463 = vmatpush.msra.mxu3 %v979_v42  ;;  %1016 = vmatpush.msra.mxu0 %v995_v48  ;;  %v617_v25 = vld [vmem:[#allocation2 + $0x38] sm:$0xff]  ;;  %v611_v45 = vld [vmem:[#allocation2 + $0x68] sm:$0xff] }
 0x15e   : > { %v851_v28 = vmul.f32 %v1637_v18, %v850_v24  ;;  %v738_v29 = vsub.f32 1.0, %v737_v26  ;;  %1081 = vmatpush.msra.mxu1 %v979_v42  ;;  %1448 = vmatpush.msra.mxu2 %v994_v49  ;;  %v620_v48 = vld [vmem:[#allocation2 + $0x78] sm:$0xff] }
 0x15f   : > { %934 = vperm.xlu0 %1604, %v847_v22   ;;  %1464 = vmatpush.msra.mxu3 %v978_v50 }
 0x160   : > { %v852_v33 = vadd.f32 %v1637_v18, %v851_v28  ;;  %v739_v34 = vmul.f32 %v1639_v21, %v738_v29  ;;  %1017 = vmatpush.msra.mxu0 %v994_v49  ;;  %1082 = vmatpush.msra.mxu1 %v978_v50  ;;  %v964_v28 = vld [vmem:[%s2121_s22 + $0x30] sm:$0xff]  ;;  %v973_v29 = vld [vmem:[%s2121_s22 + $0x78] sm:$0xff] }
 0x161   : > { %1449 = vmatpush.msra.mxu2 %v993_v52  ;;  %1465 = vmatpush.msra.mxu3 %v977_v46 }
 0x162   : > { %v856_v35 = vsel %vm855_vm12, %v1637_v18, %v852_v33  ;;  %v740_v37 = vadd.f32 %v1639_v21, %v739_v34  ;;  %1018 = vmatpush.msra.mxu0 %v993_v52  ;;  %1083 = vmatpush.msra.mxu1 %v977_v46  ;;  %v607_v18 = vld [vmem:[#allocation2] sm:$0xff]  ;;  %v609_v33 = vld [vmem:[#allocation2 + $0x18] sm:$0xff]  ;;  %v621_v52 = vld [vmem:[#allocation2 + $0x28] sm:$0xff] }
 0x163   : > { %v861_v38 = vsel %vm858_vm13, %v860_v32, %v856_v35  ;;  %1450 = vmatpush.msra.mxu2 %v992_v53  ;;  %1466 = vmatpush.msra.mxu3 %v976_v54  ;;  %v618_v32 = vld [vmem:[#allocation2 + $0x60] sm:$0xff] }
 0x164   : > { %939 = vperm.xlu2 %1606, %v861_v38   ;;  %v744_v39 = vsel %vm743_vm14, %v1639_v21, %v740_v37  ;;  %1019 = vmatpush.msra.mxu0 %v992_v53  ;;  %v972_v21 = vld [vmem:[%s2121_s22 + $0x70] sm:$0xff]  ;;  %v965_v37 = vld [vmem:[%s2121_s22 + $0x38] sm:$0xff]  ;;  %v612_v53 = vld [vmem:[#allocation2 + $0x8] sm:$0xff] }
 0x165   : > { %v749_v36 = vsel %vm746_vm0, %v748_v30, %v744_v39  ;;  %1084 = vmatpush.msra.mxu1 %v976_v54  ;;  %1451 = vmatpush.msra.mxu2 %v991_v55 }
 0x166   : > { %1467 = vmatpush.msra.mxu3 %v975_v56  ;;  %1020 = vmatpush.msra.mxu0 %v991_v55 }
 0x167   : > { %899 = vperm.xlu0 %1604, %v749_v36   ;;  %1085 = vmatpush.msra.mxu1 %v975_v56  ;;  %v619_v36 = vld [vmem:[#allocation2 + $0x70] sm:$0xff] }
 0x168   : > { %1452 = vmatpush.msra.mxu2 %v990_v57  ;;  %1468 = vmatpush.msra.mxu3 %v974_v58 }
 0x169   : > { %1021 = vmatpush.msra.mxu0 %v990_v57  ;;  %1086 = vmatpush.msra.mxu1 %v974_v58  ;;  %v613_v57 = vld [vmem:[#allocation2 + $0x48] sm:$0xff] }
 0x16a   : > { %1111 = vmatmul.f32.vlgmr.msra.gmra.mxu3 %v966_v59  ;;  %1087 = vmatmul.f32.vlgmr.msra.gmra.mxu1 %v958_v60 }
 0x172   : > { %1114 = vmatmul.f32.gmra.mxu3 %v967_v62  ;;  %1090 = vmatmul.f32.gmra.mxu1 %v959_v63 }
 0x17a   : > { %1117 = vmatmul.f32.gmra.mxu3 %v968_v0  ;;  %1093 = vmatmul.f32.gmra.mxu1 %v960_v1  ;;  %v2587_v0 = vld [vmem:[%s2765_s20] ss:$0 sm:$0xff] }
 0x182   : > { %1120 = vmatmul.f32.gmra.mxu3 %v969_v2  ;;  %1096 = vmatmul.f32.gmra.mxu1 %v961_v7 }
 0x18a   : > { %1123 = vmatmul.f32.gmra.mxu3 %v970_v8  ;;  %1099 = vmatmul.f32.gmra.mxu1 %v962_v61 }
 0x192   : > { %1126 = vmatmul.f32.gmra.mxu3 %v971_v16  ;;  %1102 = vmatmul.f32.gmra.mxu1 %v963_v20 }
 0x198   : > { %v915_v14 = vpop.permute.xlu2 %914 }
 0x199   : > { %v952_v19 = vmul.f32 %v915_v14, %v616_v15 }
 0x19a   : > { %1129 = vmatmul.f32.gmra.mxu3 %v972_v21  ;;  %1105 = vmatmul.f32.gmra.mxu1 %v964_v28 }
 0x1a0   : > { %v875_v22 = vpop.permute.xlu2 %874 }
 0x1a1   : > { %v944_v26 = vmul.f32 %v875_v22, %v608_v23 }
 0x1a2   : > { %1132 = vmatmul.f32.gmra.mxu3 %v973_v29  ;;  %1108 = vmatmul.f32.gmra.mxu1 %v965_v37 }
 0x1ab   : > { %v925_v34 = vpop.permute.xlu2 %924 }
 0x1ac   : > { %v954_v30 = vmul.f32 %v925_v34, %v618_v32 }
 0x1ae   : > { %v910_v51 = vpop.permute.xlu1 %909 }
 0x1af   : > { %v905_v4 = vpop.permute.xlu0 %904  ;;  %v951_v10 = vmul.f32 %v910_v51, %v615_v6 }
 0x1b0   : > { %v950_v5 = vmul.f32 %v905_v4, %v614_v3 }
 0x1b2   : > { %1046 = vmatmul.f32.vlgmr.msra.gmra.mxu2 %v950_v5 }
 0x1b3   : > { %v890_v44 = vpop.permute.xlu2 %889 }
 0x1b4   : > { %v947_v42 = vmul.f32 %v890_v44, %v611_v45 }
 0x1b6   : > { %v870_v17 = vpop.permute.xlu1 %869 }
 0x1b7   : > { %v865_v11 = vpop.permute.xlu0 %864  ;;  %v943_v12 = vmul.f32 %v870_v17, %v607_v18 }
 0x1b8   : > { %v942_v13 = vmul.f32 %v865_v11, %v606_v9 }
 0x1ba   : > { %1022 = vmatmul.f32.vlgmr.msra.gmra.mxu0 %v942_v13  ;;  %1049 = vmatmul.f32.gmra.mxu2 %v951_v10 }
 0x1be   : > { %v880_v31 = vpop.permute.xlu1 %879  ;;  %v940_v50 = vpop.permute.xlu2 %939 }
 0x1bf   : > { %v945_v35 = vmul.f32 %v880_v31, %v609_v33  ;;  %v957_v54 = vmul.f32 %v940_v50, %v621_v52 }
 0x1c1   : > { %v920_v24 = vpop.permute.xlu0 %919 }
 0x1c2   : > { %1025 = vmatmul.f32.gmra.mxu0 %v943_v12  ;;  %1052 = vmatmul.f32.gmra.mxu2 %v952_v19  ;;  %v953_v27 = vmul.f32 %v920_v24, %v617_v25 }
 0x1c6   : > { %v930_v39 = vpop.permute.xlu1 %929 }
 0x1c7   : > { %v955_v41 = vmul.f32 %v930_v39, %v619_v36 }
 0x1c9   : > { %v885_v38 = vpop.permute.xlu0 %884 }
 0x1ca   : > { %1028 = vmatmul.f32.gmra.mxu0 %v944_v26  ;;  %1055 = vmatmul.f32.gmra.mxu2 %v953_v27  ;;  %v946_v43 = vmul.f32 %v885_v38, %v610_v40 }
 0x1ce   : > { %v895_v46 = vpop.permute.xlu1 %894 }
 0x1cf   : > { %v948_v55 = vmul.f32 %v895_v46, %v612_v53 }
 0x1d1   : > { %v935_v47 = vpop.permute.xlu0 %934 }
 0x1d2   : > { %1031 = vmatmul.f32.gmra.mxu0 %v945_v35  ;;  %1058 = vmatmul.f32.gmra.mxu2 %v954_v30  ;;  %v956_v49 = vmul.f32 %v935_v47, %v620_v48 }
 0x1d9   : > { %v900_v56 = vpop.permute.xlu0 %899 }
 0x1da   : > { %1034 = vmatmul.f32.gmra.mxu0 %v946_v43  ;;  %1061 = vmatmul.f32.gmra.mxu2 %v955_v41  ;;  %v949_v58 = vmul.f32 %v900_v56, %v613_v57 }
 0x1e2   : > { %1037 = vmatmul.f32.gmra.mxu0 %v947_v42  ;;  %1064 = vmatmul.f32.gmra.mxu2 %v956_v49 }
 0x1e7   : > { %v1088_v60 = vpop.f32.mrf.mxu1 }
 0x1ea   : > { %1040 = vmatmul.f32.gmra.mxu0 %v948_v55  ;;  %1067 = vmatmul.f32.gmra.mxu2 %v957_v54 }
 0x1ed   : > { %v1112_v59 = vpop.f32.mrf.mxu3 }
 0x1ef   : > { %v1091_v63 = vpop.f32.mrf.mxu1 }
 0x1f2   : > { %1043 = vmatmul.f32.gmra.mxu0 %v949_v58 }
 0x1f5   : > { %v1115_v62 = vpop.f32.mrf.mxu3 }
 0x1f7   : > { %v1094_v8 = vpop.f32.mrf.mxu1 }
 0x1fd   : > { %v1118_v51 = vpop.f32.mrf.mxu3 }
 0x1ff   : > { %v1097_v12 = vpop.f32.mrf.mxu1 }
 0x205   : > { %v1121_v17 = vpop.f32.mrf.mxu3 }
 0x207   : > { %v1100_v32 = vpop.f32.mrf.mxu1 }
 0x20d   : > { %v1124_v28 = vpop.f32.mrf.mxu3 }
 0x20f   : > { %v1103_v44 = vpop.f32.mrf.mxu1 }
 0x215   : > { %v1127_v40 = vpop.f32.mrf.mxu3 }
 0x217   : > { %v1106_v56 = vpop.f32.mrf.mxu1 }
 0x21d   : > { %v1130_v53 = vpop.f32.mrf.mxu3 }
 0x235   : > { %v1047_v1 = vpop.f32.mrf.mxu2 }
 0x236   : > { %v1113_v2 = vadd.f32 %v1112_v59, %v1047_v1 }
 0x237   : > { %v1023_v3 = vpop.f32.mrf.mxu0 }
 0x238   : > { %v1148_v4 = vadd.f32 %v2587_v0, %v1113_v2  ;;  %v1089_v5 = vadd.f32 %v1088_v60, %v1023_v3  ;;  %v1133_v3 = vpop.f32.mrf.mxu3 }
 0x23a   : > { %v1164_v6 = vmax.f32 %v1148_v4, 0.0  ;;  %v1140_v7 = vadd.f32 %v2587_v0, %v1089_v5 }
 0x23c   : > { %1180 = vst [vmem:[%s2147_s13 + $0x40] sm:$0xff] %v1164_v6  ;;  %v1156_v9 = vmax.f32 %v1140_v7, 0.0 }
 0x23d   : > { %v1050_v10 = vpop.f32.mrf.mxu2 }
 0x23e   : > { %1172 = vst [vmem:[%s2147_s13] sm:$0xff] %v1156_v9  ;;  %v1116_v11 = vadd.f32 %v1115_v62, %v1050_v10 }
 0x23f   : > { %v1026_v13 = vpop.f32.mrf.mxu0 }
 0x240   : > { %v1149_v14 = vadd.f32 %v2587_v0, %v1116_v11  ;;  %v1092_v15 = vadd.f32 %v1091_v63, %v1026_v13 }
 0x242   : > { %v1165_v61 = vmax.f32 %v1149_v14, 0.0  ;;  %v1141_v16 = vadd.f32 %v2587_v0, %v1092_v15 }
 0x244   : > { %1181 = vst [vmem:[%s2147_s13 + $0x48] sm:$0xff] %v1165_v61  ;;  %v1157_v18 = vmax.f32 %v1141_v16, 0.0 }
 0x245   : > { %v1053_v19 = vpop.f32.mrf.mxu2 }
 0x246   : > { %1173 = vst [vmem:[%s2147_s13 + $0x8] sm:$0xff] %v1157_v18  ;;  %v1119_v20 = vadd.f32 %v1118_v51, %v1053_v19  ;;  %v1109_v51 = vpop.f32.mrf.mxu1 }
 0x247   : > { %v1029_v21 = vpop.f32.mrf.mxu0 }
 0x248   : > { %v1150_v22 = vadd.f32 %v2587_v0, %v1119_v20  ;;  %v1095_v23 = vadd.f32 %v1094_v8, %v1029_v21 }
 0x24a   : > { %v1166_v24 = vmax.f32 %v1150_v22, 0.0  ;;  %v1142_v25 = vadd.f32 %v2587_v0, %v1095_v23 }
 0x24c   : > { %1182 = vst [vmem:[%s2147_s13 + $0x50] sm:$0xff] %v1166_v24  ;;  %v1158_v26 = vmax.f32 %v1142_v25, 0.0 }
 0x24d   : > { %v1056_v27 = vpop.f32.mrf.mxu2 }
 0x24e   : > { %1174 = vst [vmem:[%s2147_s13 + $0x10] sm:$0xff] %v1158_v26  ;;  %v1122_v29 = vadd.f32 %v1121_v17, %v1056_v27 }
 0x24f   : > { %v1032_v31 = vpop.f32.mrf.mxu0 }
 0x250   : > { %v1151_v33 = vadd.f32 %v2587_v0, %v1122_v29  ;;  %v1098_v34 = vadd.f32 %v1097_v12, %v1032_v31 }
 0x252   : > { %v1167_v30 = vmax.f32 %v1151_v33, 0.0  ;;  %v1143_v35 = vadd.f32 %v2587_v0, %v1098_v34 }
 0x254   : > { %1183 = vst [vmem:[%s2147_s13 + $0x58] sm:$0xff] %v1167_v30  ;;  %v1159_v37 = vmax.f32 %v1143_v35, 0.0 }
 0x255   : > { %v1059_v38 = vpop.f32.mrf.mxu2 }
 0x256   : > { %1175 = vst [vmem:[%s2147_s13 + $0x18] sm:$0xff] %v1159_v37  ;;  %v1125_v39 = vadd.f32 %v1124_v28, %v1059_v38 }
 0x257   : > { %v1035_v36 = vpop.f32.mrf.mxu0 }
 0x258   : > { %v1152_v41 = vadd.f32 %v2587_v0, %v1125_v39  ;;  %v1101_v43 = vadd.f32 %v1100_v32, %v1035_v36 }
 0x25a   : > { %v1168_v45 = vmax.f32 %v1152_v41, 0.0  ;;  %v1144_v47 = vadd.f32 %v2587_v0, %v1101_v43 }
 0x25c   : > { %1184 = vst [vmem:[%s2147_s13 + $0x60] sm:$0xff] %v1168_v45  ;;  %v1160_v48 = vmax.f32 %v1144_v47, 0.0 }
 0x25d   : > { %v1062_v42 = vpop.f32.mrf.mxu2 }
 0x25e   : > { %1176 = vst [vmem:[%s2147_s13 + $0x20] sm:$0xff] %v1160_v48  ;;  %v1128_v49 = vadd.f32 %v1127_v40, %v1062_v42 }
 0x25f   : > { %v1038_v50 = vpop.f32.mrf.mxu0 }
 0x260   : > { %v1153_v52 = vadd.f32 %v2587_v0, %v1128_v49  ;;  %v1104_v46 = vadd.f32 %v1103_v44, %v1038_v50 }
 0x262   : > { %v1169_v54 = vmax.f32 %v1153_v52, 0.0  ;;  %v1145_v55 = vadd.f32 %v2587_v0, %v1104_v46 }
 0x264   : > { %1185 = vst [vmem:[%s2147_s13 + $0x68] sm:$0xff] %v1169_v54  ;;  %v1161_v57 = vmax.f32 %v1145_v55, 0.0 }
 0x265   : > { %v1065_v58 = vpop.f32.mrf.mxu2 }
 0x266   : > { %1177 = vst [vmem:[%s2147_s13 + $0x28] sm:$0xff] %v1161_v57  ;;  %v1131_v59 = vadd.f32 %v1130_v53, %v1065_v58 }
 0x267   : > { %v1041_v60 = vpop.f32.mrf.mxu0 }
 0x268   : > { %v1154_v62 = vadd.f32 %v2587_v0, %v1131_v59  ;;  %v1107_v63 = vadd.f32 %v1106_v56, %v1041_v60 }
 0x26a   : > { %v1170_v1 = vmax.f32 %v1154_v62, 0.0  ;;  %v1146_v2 = vadd.f32 %v2587_v0, %v1107_v63 }
 0x26c   : > { %1186 = vst [vmem:[%s2147_s13 + $0x70] sm:$0xff] %v1170_v1  ;;  %v1162_v4 = vmax.f32 %v1146_v2, 0.0 }
 0x26d   : > { %v1068_v5 = vpop.f32.mrf.mxu2 }
 0x26e   : > { %1178 = vst [vmem:[%s2147_s13 + $0x30] sm:$0xff] %v1162_v4  ;;  %v1134_v6 = vadd.f32 %v1133_v3, %v1068_v5 }
 0x26f   : > { %v1044_v7 = vpop.f32.mrf.mxu0 }
 0x270   : > { %v1155_v8 = vadd.f32 %v2587_v0, %v1134_v6  ;;  %v1110_v9 = vadd.f32 %v1109_v51, %v1044_v7 }
 0x272   : > { %v1171_v10 = vmax.f32 %v1155_v8, 0.0  ;;  %v1147_v11 = vadd.f32 %v2587_v0, %v1110_v9 }
 0x274   : > { %1187 = vst [vmem:[%s2147_s13 + $0x78] sm:$0xff] %v1171_v10  ;;  %v1163_v13 = vmax.f32 %v1147_v11, 0.0 }
 0x276   : > { %1179 = vst [vmem:[%s2147_s13 + $0x38] sm:$0xff] %v1163_v13 }
 0x277 PF: > { %s1388_s3 = sshll.u32 %s1882_s8, 7  ;;  %s2766_s19 = sld [smem:[#allocation27_spill]] }
 0x278   : > { %s1201_s7 = sshll.u32 %s2147_s13, 4  ;;  %s1189_s18 = scalar_lea.sflag [#allocation5], %s363_s21  ;;  %s1202_s7 = int_to_ptr.vmem [resolvable:$true] %s1201_s7 }
 0x27d   : > { %s1200_s15 = scalar_lea.hbm %s2766_s19, %s1388_s3  ;;  %s1780_s8 = scalar_lea.hbm %s2766_s19, 256 }
 0x27e   : > { %s1203_s27 = sshll.u32 %s1200_s15, 4  ;;  %s1204_s27 = int_to_ptr.hbm [resolvable:$true] %s1203_s27 }
 0x27f   : > { %s1774_s17 = sshra.s32 %s1204_s27, 4  ;;  %s1775_s17 = int_to_ptr.hbm [resolvable:$true] %s1774_s17 }
 0x280   : > { %s1776_s23 = scalar_lea.hbm %s1775_s17, 128  ;;  %p1781_p12 = scmp.lt.s32.totalorder %s1775_s17, %s2766_s19 }
 0x281   : > { %p1777_p2 = scmp.ne.s32.totalorder %s1775_s17, %s1776_s23  ;;  %p1782_p13 = scmp.lt.s32.totalorder %s1780_s8, %s1776_s23 }
 0x283   : > { %p1778_p9 = pnand %p1777_p2, %p2091_p7  ;;  %p1783_p0 = por %p1782_p13, %p1781_p12 }
 0x285   : > { %p1779_p11 = pneg %p1778_p9 }
 0x287   : > { %p1784_p5 = pnand %p1783_p0, %p1779_p11 }
 0x289   : > { %1787 = shalt.err (!%p1784_p5)
}
 0x28a   : > { %s1903_s21 = smov 128   ;;  %s1904_s13 = smov 8  }
 0x28b   : > { %1481 = dma.vmem_to_hbm [thread:$0]  (%p2091_p7), %s1202_s7, 2048, %s1204_s27, %s1189_s18, %s1903_s21, %s1903_s21, %s1904_s13  }
 0x28c PF: > { %s2767_s30 = sld [smem:[#allocation17_spill]]  ;;  %p1506_p3 = scmp.ge.s32.totalorder %s1894_s11, 2 }
 0x28e   : > { %p1498_p4 = pnand %p1506_p3, %p2020_p8 }
 0x290   : > { %p1499_p10 = pneg %p1498_p4 }
 0x292   : > { %s1218_s20 = sand.u32 1, %s2767_s30  }
 0x293   : > { %s1219_s3 = scalar_lea.sflag [#allocation5], %s1218_s20 }
 0x294   : > { %1849 = dma.done.wait (%p1499_p10), %s1219_s3, 2048  }
 0x295   : > { %1851 = vsyncadd (%p1499_p10), %s1219_s3, 4294965248  ;;  %s27_s11 = sadd.s32 1, %s1894_s11   ;;  %s2769_s1 = sld [smem:[#allocation19_spill]] }
 0x296   : > { %p24_p1 = scmp.ge.s32.totalorder %s27_s11, 6   ;;  %s2770_s22 = sld [smem:[#allocation20_spill]] }
 0x297   : > { %s2771_s24 = smov %s1858_s25  ;;  %s2772_s25 = smov %s1862_s26 }
 0x298   : > { %s2773_s26 = smov %s2087_s5  ;;  %s2774_s27 = smov %s1870_s28 }
 0x299   : > { %s2775_s28 = smov %s1874_s29  ;;  %s2776_s29 = smov %s2071_s6 }
 0x29a   : > { %s2777_s30 = smov %s1886_s9  ;;  %s2778_s8 = smov %s1890_s10 }
 0x29b   : > { %s2779_s9 = smov %s2769_s1  ;;  %26 = sbr.rel (!%p24_p1) target bundleno = 20 (0x14), region = 128 }
 0x29c   : > { %s2780_s10 = smov %s2770_s22 }
 0x2a0   :  { %1225 = vsyncpa [#allocation4], 1 }
 0x2a1   :  { %1227 = vsyncpa [#allocation4 + $0x1], 1 }
 0x2a2   :  { %1228 = vsyncpa [#allocation7], 1 }
 0x2a3   :  { %1230 = vsyncpa [#allocation7 + $0x1], 1 }
 0x2a4   :  { %1231 = vsyncpa [#allocation10], 1 }
 0x2a5   :  { %1232 = vsyncpa [#allocation5], 1 }
 0x2a6   :  { %1234 = vsyncpa [#allocation5 + $0x1], 1 }

</bundles_post_ra>
